<compile_context>
chip_gen: v5e
topology: v5e:2x2
jax: 0.10.0
libtpu: 0.0.40
codegen_flags: <defaults>
</compile_context>

<pallas_src>
import functools

import jax
import jax.numpy as jnp
import numpy as np
from jax.experimental import pallas as pl
from jax.experimental.pallas import tpu as pltpu


# ----------------------------------------------------------------------------
# Kernel A: conv1 -> ReLU -> conv2 (+ per-block BN partial sums), fused.
# ----------------------------------------------------------------------------
def _conv_bn_stats_kernel(x_ref, w1_ref, b1_ref, w2_ref, b2_ref, mask_ref,
                          y_ref, sum_ref, sq_ref,
                          *, shifts, matmul_dtype):
    """Channel-major fused conv1+relu+conv2; 9 shift+mask matmuls per conv."""
    bt, _, hw = x_ref.shape
    n_out = w2_ref.shape[1]
    n_taps = len(shifts)
    center = n_taps // 2                       # tap (dy, dx) == (0, 0)

    # Hoist resident tap weights / validity masks out of the per-image loop.
    w1_taps = [w1_ref[t] for t in range(n_taps)]
    w2_taps = [w2_ref[t] for t in range(n_taps)]
    m_taps = [mask_ref[t] for t in range(n_taps)]     # each (1, hw) f32
    b1 = b1_ref[...]                                  # (mid, 1) f32
    b2 = b2_ref[...]                                  # (out, 1) f32

    def conv3x3(inp, w_taps):
        # inp: (c_in, hw) f32 -> (c_out, hw) f32 accumulator.
        acc = None
        for t, s in enumerate(shifts):
            # shifted[p] = inp[p + s]  (wrap positions are zeroed by the mask)
            shifted = inp if s == 0 else pltpu.roll(inp, (-s) % hw, axis=1)
            masked = shifted if t == center else shifted * m_taps[t]
            if matmul_dtype is not None:
                masked = masked.astype(matmul_dtype)
            part = jnp.dot(w_taps[t], masked,
                           preferred_element_type=jnp.float32)
            acc = part if acc is None else acc + part
        return acc

    s_acc = jnp.zeros((n_out, 1), jnp.float32)
    q_acc = jnp.zeros((n_out, 1), jnp.float32)
    for b in range(bt):
        x_im = x_ref[b]                                      # (Cin, hw) f32
        h1 = jnp.maximum(conv3x3(x_im, w1_taps) + b1, 0.0)   # stays in VMEM
        y2 = conv3x3(h1, w2_taps) + b2                       # (out, hw)
        y_ref[b] = y2
        s_acc = s_acc + jnp.sum(y2, axis=1, keepdims=True)
        q_acc = q_acc + jnp.sum(y2 * y2, axis=1, keepdims=True)
    sum_ref[...] = s_acc[None]                               # (1, out, 1)
    sq_ref[...] = q_acc[None]


# ----------------------------------------------------------------------------
# Kernel B: BatchNorm affine + ReLU + 2x2/2 max-pool (rolls + one gather mm).
# ----------------------------------------------------------------------------
def _bn_relu_pool_kernel(y_ref, scale_ref, shift_ref, sel_ref,
                         full_ref, pool_ref, *, width):
    bt, _, hw = y_ref.shape
    scale = scale_ref[...]                    # (out, 1)
    shift = shift_ref[...]                    # (out, 1)
    sel = sel_ref[...]                        # (hw, hp*wp) hoisted 0/1 gather
    for b in range(bt):
        z = jnp.maximum(y_ref[b] * scale + shift, 0.0)             # (out, hw)
        full_ref[b] = z
        # Pair-max down (p vs p+W) then right (p vs p+1); the wrap garbage at
        # the last row / odd columns is never selected by `sel`.
        vmax = jnp.maximum(z, pltpu.roll(z, hw - width, axis=1))
        hmax = jnp.maximum(vmax, pltpu.roll(vmax, hw - 1, axis=1))
        pool_ref[b] = jnp.dot(hmax, sel, preferred_element_type=jnp.float32)


def _pick_batch_tile(n):
    """Largest divisor of n (<=8) that still leaves >=2 grid steps (megacore)."""
    best = 1
    for d in range(1, min(max(n // 2, 1), 8) + 1):
        if n % d == 0:
            best = d
    return best


# ----------------------------------------------------------------------------
# Block.forward
# ----------------------------------------------------------------------------
def block_forward(x_nchw, params, *, eps=1e-5, matmul_dtype=jnp.bfloat16,
                  batch_tile=None):
    """Returns (pool(x), x) exactly like the PyTorch Block (NCHW in / out)."""
    n, cin, h, w = x_nchw.shape
    assert h % 2 == 0 and w % 2 == 0, "max-pool 2x2/2 expects even H, W"
    hw = h * w
    hp, wp = h // 2, w // 2
    phw = hp * wp
    mid = params["w1"].shape[-1]
    out = params["w2"].shape[-1]

    if batch_tile is None:
        batch_tile = _pick_batch_tile(n)
    assert n % batch_tile == 0
    n_steps = n // batch_tile

    wdt = jnp.float32 if matmul_dtype is None else matmul_dtype

    # NCHW -> channel-major flattened spatial is a free reshape (no transpose).
    x = x_nchw.reshape(n, cin, hw).astype(jnp.float32)
    # Weights pre-transposed to (tap, c_out, c_in) and pre-cast for the MXU.
    w1t = jnp.transpose(params["w1"], (0, 1, 3, 2)).reshape(9, mid, cin).astype(wdt)
    w2t = jnp.transpose(params["w2"], (0, 1, 3, 2)).reshape(9, out, mid).astype(wdt)
    b1 = params["b1"].astype(jnp.float32).reshape(mid, 1)
    b2 = params["b2"].astype(jnp.float32).reshape(out, 1)

    # Per-tap flattened-spatial shift and boundary-validity mask (host consts).
    hh, ww = np.divmod(np.arange(hw), w)
    shifts = []
    masks = np.zeros((9, 1, hw), np.float32)
    t = 0
    for dy in (-1, 0, 1):
        for dx in (-1, 0, 1):
            shifts.append(dy * w + dx)
            masks[t, 0] = ((hh + dy >= 0) & (hh + dy < h) &
                           (ww + dx >= 0) & (ww + dx < w))
            t += 1
    shifts = tuple(shifts)

    # ---- fused conv1 + relu + conv2 + partial BN stats ----------------------
    kernel_a = functools.partial(_conv_bn_stats_kernel, shifts=shifts,
                                 matmul_dtype=matmul_dtype)
    y2, psum, psq = pl.pallas_call(
        kernel_a,
        out_shape=(
            jax.ShapeDtypeStruct((n, out, hw), jnp.float32),
            jax.ShapeDtypeStruct((n_steps, out, 1), jnp.float32),
            jax.ShapeDtypeStruct((n_steps, out, 1), jnp.float32),
        ),
        grid=(n_steps,),
        in_specs=[
            pl.BlockSpec((batch_tile, cin, hw), lambda i: (i, 0, 0)),
            pl.BlockSpec((9, mid, cin), lambda i: (0, 0, 0)),
            pl.BlockSpec((mid, 1), lambda i: (0, 0)),
            pl.BlockSpec((9, out, mid), lambda i: (0, 0, 0)),
            pl.BlockSpec((out, 1), lambda i: (0, 0)),
            pl.BlockSpec((9, 1, hw), lambda i: (0, 0, 0)),
        ],
        out_specs=(
            pl.BlockSpec((batch_tile, out, hw), lambda i: (i, 0, 0)),
            pl.BlockSpec((1, out, 1), lambda i: (i, 0, 0)),
            pl.BlockSpec((1, out, 1), lambda i: (i, 0, 0)),
        ),
        compiler_params=pltpu.CompilerParams(
            dimension_semantics=("parallel",)),
    )(x, w1t, b1, w2t, b2, jnp.asarray(masks))

    # ---- training-mode batch statistics (biased variance) -------------------
    cnt = float(n * hw)
    mean = jnp.sum(psum[:, :, 0], axis=0) / cnt
    var = jnp.maximum(jnp.sum(psq[:, :, 0], axis=0) / cnt - mean * mean, 0.0)
    scale = params["gamma"].astype(jnp.float32) * jax.lax.rsqrt(var + eps)
    shift = params["beta"].astype(jnp.float32) - mean * scale
    # TODO(synk): running_mean / running_var buffer updates (module training
    # state) are not modeled; only the returned tensors are reproduced.

    # Hoisted 0/1 gather matrix picking even-row / even-col lanes.
    sel = np.zeros((hw, phw), np.float32)
    ii, jj = np.divmod(np.arange(phw), wp)
    sel[(2 * ii) * w + 2 * jj, np.arange(phw)] = 1.0

    # ---- BN affine + relu + 2x2 max-pool ------------------------------------
    kernel_b = functools.partial(_bn_relu_pool_kernel, width=w)
    full, pooled = pl.pallas_call(
        kernel_b,
        out_shape=(
            jax.ShapeDtypeStruct((n, out, hw), jnp.float32),
            jax.ShapeDtypeStruct((n, out, phw), jnp.float32),
        ),
        grid=(n_steps,),
        in_specs=[
            pl.BlockSpec((batch_tile, out, hw), lambda i: (i, 0, 0)),
            pl.BlockSpec((out, 1), lambda i: (0, 0)),
            pl.BlockSpec((out, 1), lambda i: (0, 0)),
            pl.BlockSpec((hw, phw), lambda i: (0, 0)),
        ],
        out_specs=(
            pl.BlockSpec((batch_tile, out, hw), lambda i: (i, 0, 0)),
            pl.BlockSpec((batch_tile, out, phw), lambda i: (i, 0, 0)),
        ),
        compiler_params=pltpu.CompilerParams(
            dimension_semantics=("parallel",)),
    )(y2, scale.reshape(out, 1), shift.reshape(out, 1), jnp.asarray(sel))
    # TODO(synk): kernels A and B could be fused into one 2-phase pallas_call
    # (y2 resident in VMEM) to drop one launch + one HBM round trip of y2.

    # Channel-major -> NCHW is a free reshape.
    return pooled.reshape(n, out, hp, wp), full.reshape(n, out, h, w)


# ----------------------------------------------------------------------------
# Pure-JAX reference for verification.
# ----------------------------------------------------------------------------
def block_reference(x_nchw, p, eps=1e-5):
    x = jnp.transpose(x_nchw, (0, 2, 3, 1)).astype(jnp.float32)
    dn = ("NHWC", "HWIO", "NHWC")
    h1 = jax.lax.conv_general_dilated(x, p["w1"], (1, 1), "SAME",
                                      dimension_numbers=dn) + p["b1"]
    h1 = jnp.maximum(h1, 0.0)
    y2 = jax.lax.conv_general_dilated(h1, p["w2"], (1, 1), "SAME",
                                      dimension_numbers=dn) + p["b2"]
    mean = jnp.mean(y2, axis=(0, 1, 2))
    var = jnp.var(y2, axis=(0, 1, 2))
    z = (y2 - mean) * jax.lax.rsqrt(var + eps) * p["gamma"] + p["beta"]
    z = jnp.maximum(z, 0.0)
    n, h, w, c = z.shape
    pooled = jnp.max(z.reshape(n, h // 2, 2, w // 2, 2, c), axis=(2, 4))
    return (jnp.transpose(pooled, (0, 3, 1, 2)),
            jnp.transpose(z, (0, 3, 1, 2)))


if __name__ == "__main__":
    # Small shapes consistent with the module (Conv2d 3x3 pad 1, BN, 2x2 pool).
    N, Cin, H, W = 2, 4, 16, 16
    mid, out = 32, 32

    key = jax.random.PRNGKey(0)
    kx, k1, k2, k3, k4, k5, k6 = jax.random.split(key, 7)
    x = jax.random.uniform(kx, (N, Cin, H, W), jnp.float32)   # like images/255

    params = dict(
        w1=0.10 * jax.random.normal(k1, (3, 3, Cin, mid), jnp.float32),
        b1=0.10 * jax.random.normal(k2, (mid,), jnp.float32),
        w2=0.05 * jax.random.normal(k3, (3, 3, mid, out), jnp.float32),
        b2=0.10 * jax.random.normal(k4, (out,), jnp.float32),
        gamma=1.0 + 0.1 * jax.random.normal(k5, (out,), jnp.float32),
        beta=0.10 * jax.random.normal(k6, (out,), jnp.float32),
    )

    ref_pooled, ref_full = block_reference(x, params)

    # Default (perf) path: bf16 MXU operands, f32 accumulation.
    pooled_bf, full_bf = jax.jit(block_forward)(x, params)
    jax.block_until_ready((pooled_bf, full_bf))

    # Strict-parity path: pure f32 matmuls.
    pooled_f32, full_f32 = jax.jit(
        functools.partial(block_forward, matmul_dtype=None))(x, params)
    jax.block_until_ready((pooled_f32, full_f32))

    np.testing.assert_allclose(np.asarray(full_f32), np.asarray(ref_full),
                               rtol=1e-3, atol=1e-3)
    np.testing.assert_allclose(np.asarray(pooled_f32), np.asarray(ref_pooled),
                               rtol=1e-3, atol=1e-3)
    # bf16 operands: parity tolerance gated accordingly (per review).
    np.testing.assert_allclose(np.asarray(full_bf), np.asarray(ref_full),
                               rtol=5e-2, atol=5e-2)
    np.testing.assert_allclose(np.asarray(pooled_bf), np.asarray(ref_pooled),
                               rtol=5e-2, atol=5e-2)
    print("KERNEL_OK")
</pallas_src>

<mosaic_0001>
module attributes {stable_mosaic.version = 11 : i64} {
  func.func @_conv_bn_stats_kernel(%arg0: i32, %arg1: memref<1x4x256xf32, #tpu.memory_space<vmem>>, %arg2: memref<9x32x4xbf16, #tpu.memory_space<vmem>>, %arg3: memref<32x1xf32, #tpu.memory_space<vmem>>, %arg4: memref<9x32x32xbf16, #tpu.memory_space<vmem>>, %arg5: memref<32x1xf32, #tpu.memory_space<vmem>>, %arg6: memref<9x1x256xf32, #tpu.memory_space<vmem>>, %arg7: memref<1x32x256xf32, #tpu.memory_space<vmem>>, %arg8: memref<1x32x1xf32, #tpu.memory_space<vmem>>, %arg9: memref<1x32x1xf32, #tpu.memory_space<vmem>>) attributes {dimension_semantics = [#tpu.dimension_semantics<parallel>], iteration_bounds = array<i64: 2>, scalar_prefetch = 0 : i64, scratch_operands = 0 : i64, tpu.core_type = #tpu.core_type<tc>, window_params = [{transform_indices = @transform_0, window_bounds = array<i64: 1, 4, 256>}, {pipeline_mode = #tpu.pipeline_mode<synchronous>, transform_indices = @transform_1, window_bounds = array<i64: 9, 32, 4>}, {pipeline_mode = #tpu.pipeline_mode<synchronous>, transform_indices = @transform_2, window_bounds = array<i64: 32, 1>}, {pipeline_mode = #tpu.pipeline_mode<synchronous>, transform_indices = @transform_3, window_bounds = array<i64: 9, 32, 32>}, {pipeline_mode = #tpu.pipeline_mode<synchronous>, transform_indices = @transform_4, window_bounds = array<i64: 32, 1>}, {pipeline_mode = #tpu.pipeline_mode<synchronous>, transform_indices = @transform_5, window_bounds = array<i64: 9, 1, 256>}, {transform_indices = @transform_6, window_bounds = array<i64: 1, 32, 256>}, {transform_indices = @transform_7, window_bounds = array<i64: 1, 32, 1>}, {transform_indices = @transform_8, window_bounds = array<i64: 1, 32, 1>}]} {
    %c0 = arith.constant 0 : index
    %c0_0 = arith.constant 0 : index
    %c0_1 = arith.constant 0 : index
    %0 = vector.load %arg2[%c0, %c0_0, %c0_1] : memref<9x32x4xbf16, #tpu.memory_space<vmem>>, vector<1x32x4xbf16>
    %1 = vector.shape_cast %0 : vector<1x32x4xbf16> to vector<32x4xbf16>
    %c1 = arith.constant 1 : index
    %c0_2 = arith.constant 0 : index
    %c0_3 = arith.constant 0 : index
    %2 = vector.load %arg2[%c1, %c0_2, %c0_3] : memref<9x32x4xbf16, #tpu.memory_space<vmem>>, vector<1x32x4xbf16>
    %3 = vector.shape_cast %2 : vector<1x32x4xbf16> to vector<32x4xbf16>
    %c2 = arith.constant 2 : index
    %c0_4 = arith.constant 0 : index
    %c0_5 = arith.constant 0 : index
    %4 = vector.load %arg2[%c2, %c0_4, %c0_5] : memref<9x32x4xbf16, #tpu.memory_space<vmem>>, vector<1x32x4xbf16>
    %5 = vector.shape_cast %4 : vector<1x32x4xbf16> to vector<32x4xbf16>
    %c3 = arith.constant 3 : index
    %c0_6 = arith.constant 0 : index
    %c0_7 = arith.constant 0 : index
    %6 = vector.load %arg2[%c3, %c0_6, %c0_7] : memref<9x32x4xbf16, #tpu.memory_space<vmem>>, vector<1x32x4xbf16>
    %7 = vector.shape_cast %6 : vector<1x32x4xbf16> to vector<32x4xbf16>
    %c4 = arith.constant 4 : index
    %c0_8 = arith.constant 0 : index
    %c0_9 = arith.constant 0 : index
    %8 = vector.load %arg2[%c4, %c0_8, %c0_9] : memref<9x32x4xbf16, #tpu.memory_space<vmem>>, vector<1x32x4xbf16>
    %9 = vector.shape_cast %8 : vector<1x32x4xbf16> to vector<32x4xbf16>
    %c5 = arith.constant 5 : index
    %c0_10 = arith.constant 0 : index
    %c0_11 = arith.constant 0 : index
    %10 = vector.load %arg2[%c5, %c0_10, %c0_11] : memref<9x32x4xbf16, #tpu.memory_space<vmem>>, vector<1x32x4xbf16>
    %11 = vector.shape_cast %10 : vector<1x32x4xbf16> to vector<32x4xbf16>
    %c6 = arith.constant 6 : index
    %c0_12 = arith.constant 0 : index
    %c0_13 = arith.constant 0 : index
    %12 = vector.load %arg2[%c6, %c0_12, %c0_13] : memref<9x32x4xbf16, #tpu.memory_space<vmem>>, vector<1x32x4xbf16>
    %13 = vector.shape_cast %12 : vector<1x32x4xbf16> to vector<32x4xbf16>
    %c7 = arith.constant 7 : index
    %c0_14 = arith.constant 0 : index
    %c0_15 = arith.constant 0 : index
    %14 = vector.load %arg2[%c7, %c0_14, %c0_15] : memref<9x32x4xbf16, #tpu.memory_space<vmem>>, vector<1x32x4xbf16>
    %15 = vector.shape_cast %14 : vector<1x32x4xbf16> to vector<32x4xbf16>
    %c8 = arith.constant 8 : index
    %c0_16 = arith.constant 0 : index
    %c0_17 = arith.constant 0 : index
    %16 = vector.load %arg2[%c8, %c0_16, %c0_17] : memref<9x32x4xbf16, #tpu.memory_space<vmem>>, vector<1x32x4xbf16>
    %17 = vector.shape_cast %16 : vector<1x32x4xbf16> to vector<32x4xbf16>
    %c0_18 = arith.constant 0 : index
    %c0_19 = arith.constant 0 : index
    %c0_20 = arith.constant 0 : index
    %18 = vector.load %arg4[%c0_18, %c0_19, %c0_20] : memref<9x32x32xbf16, #tpu.memory_space<vmem>>, vector<1x32x32xbf16>
    %19 = vector.shape_cast %18 : vector<1x32x32xbf16> to vector<32x32xbf16>
    %c1_21 = arith.constant 1 : index
    %c0_22 = arith.constant 0 : index
    %c0_23 = arith.constant 0 : index
    %20 = vector.load %arg4[%c1_21, %c0_22, %c0_23] : memref<9x32x32xbf16, #tpu.memory_space<vmem>>, vector<1x32x32xbf16>
    %21 = vector.shape_cast %20 : vector<1x32x32xbf16> to vector<32x32xbf16>
    %c2_24 = arith.constant 2 : index
    %c0_25 = arith.constant 0 : index
    %c0_26 = arith.constant 0 : index
    %22 = vector.load %arg4[%c2_24, %c0_25, %c0_26] : memref<9x32x32xbf16, #tpu.memory_space<vmem>>, vector<1x32x32xbf16>
    %23 = vector.shape_cast %22 : vector<1x32x32xbf16> to vector<32x32xbf16>
    %c3_27 = arith.constant 3 : index
    %c0_28 = arith.constant 0 : index
    %c0_29 = arith.constant 0 : index
    %24 = vector.load %arg4[%c3_27, %c0_28, %c0_29] : memref<9x32x32xbf16, #tpu.memory_space<vmem>>, vector<1x32x32xbf16>
    %25 = vector.shape_cast %24 : vector<1x32x32xbf16> to vector<32x32xbf16>
    %c4_30 = arith.constant 4 : index
    %c0_31 = arith.constant 0 : index
    %c0_32 = arith.constant 0 : index
    %26 = vector.load %arg4[%c4_30, %c0_31, %c0_32] : memref<9x32x32xbf16, #tpu.memory_space<vmem>>, vector<1x32x32xbf16>
    %27 = vector.shape_cast %26 : vector<1x32x32xbf16> to vector<32x32xbf16>
    %c5_33 = arith.constant 5 : index
    %c0_34 = arith.constant 0 : index
    %c0_35 = arith.constant 0 : index
    %28 = vector.load %arg4[%c5_33, %c0_34, %c0_35] : memref<9x32x32xbf16, #tpu.memory_space<vmem>>, vector<1x32x32xbf16>
    %29 = vector.shape_cast %28 : vector<1x32x32xbf16> to vector<32x32xbf16>
    %c6_36 = arith.constant 6 : index
    %c0_37 = arith.constant 0 : index
    %c0_38 = arith.constant 0 : index
    %30 = vector.load %arg4[%c6_36, %c0_37, %c0_38] : memref<9x32x32xbf16, #tpu.memory_space<vmem>>, vector<1x32x32xbf16>
    %31 = vector.shape_cast %30 : vector<1x32x32xbf16> to vector<32x32xbf16>
    %c7_39 = arith.constant 7 : index
    %c0_40 = arith.constant 0 : index
    %c0_41 = arith.constant 0 : index
    %32 = vector.load %arg4[%c7_39, %c0_40, %c0_41] : memref<9x32x32xbf16, #tpu.memory_space<vmem>>, vector<1x32x32xbf16>
    %33 = vector.shape_cast %32 : vector<1x32x32xbf16> to vector<32x32xbf16>
    %c8_42 = arith.constant 8 : index
    %c0_43 = arith.constant 0 : index
    %c0_44 = arith.constant 0 : index
    %34 = vector.load %arg4[%c8_42, %c0_43, %c0_44] : memref<9x32x32xbf16, #tpu.memory_space<vmem>>, vector<1x32x32xbf16>
    %35 = vector.shape_cast %34 : vector<1x32x32xbf16> to vector<32x32xbf16>
    %c0_45 = arith.constant 0 : index
    %c0_46 = arith.constant 0 : index
    %c0_47 = arith.constant 0 : index
    %36 = vector.load %arg6[%c0_45, %c0_46, %c0_47] : memref<9x1x256xf32, #tpu.memory_space<vmem>>, vector<1x1x256xf32>
    %37 = vector.shape_cast %36 : vector<1x1x256xf32> to vector<1x256xf32>
    %c1_48 = arith.constant 1 : index
    %c0_49 = arith.constant 0 : index
    %c0_50 = arith.constant 0 : index
    %38 = vector.load %arg6[%c1_48, %c0_49, %c0_50] : memref<9x1x256xf32, #tpu.memory_space<vmem>>, vector<1x1x256xf32>
    %39 = vector.shape_cast %38 : vector<1x1x256xf32> to vector<1x256xf32>
    %c2_51 = arith.constant 2 : index
    %c0_52 = arith.constant 0 : index
    %c0_53 = arith.constant 0 : index
    %40 = vector.load %arg6[%c2_51, %c0_52, %c0_53] : memref<9x1x256xf32, #tpu.memory_space<vmem>>, vector<1x1x256xf32>
    %41 = vector.shape_cast %40 : vector<1x1x256xf32> to vector<1x256xf32>
    %c3_54 = arith.constant 3 : index
    %c0_55 = arith.constant 0 : index
    %c0_56 = arith.constant 0 : index
    %42 = vector.load %arg6[%c3_54, %c0_55, %c0_56] : memref<9x1x256xf32, #tpu.memory_space<vmem>>, vector<1x1x256xf32>
    %43 = vector.shape_cast %42 : vector<1x1x256xf32> to vector<1x256xf32>
    %c5_57 = arith.constant 5 : index
    %c0_58 = arith.constant 0 : index
    %c0_59 = arith.constant 0 : index
    %44 = vector.load %arg6[%c5_57, %c0_58, %c0_59] : memref<9x1x256xf32, #tpu.memory_space<vmem>>, vector<1x1x256xf32>
    %45 = vector.shape_cast %44 : vector<1x1x256xf32> to vector<1x256xf32>
    %c6_60 = arith.constant 6 : index
    %c0_61 = arith.constant 0 : index
    %c0_62 = arith.constant 0 : index
    %46 = vector.load %arg6[%c6_60, %c0_61, %c0_62] : memref<9x1x256xf32, #tpu.memory_space<vmem>>, vector<1x1x256xf32>
    %47 = vector.shape_cast %46 : vector<1x1x256xf32> to vector<1x256xf32>
    %c7_63 = arith.constant 7 : index
    %c0_64 = arith.constant 0 : index
    %c0_65 = arith.constant 0 : index
    %48 = vector.load %arg6[%c7_63, %c0_64, %c0_65] : memref<9x1x256xf32, #tpu.memory_space<vmem>>, vector<1x1x256xf32>
    %49 = vector.shape_cast %48 : vector<1x1x256xf32> to vector<1x256xf32>
    %c8_66 = arith.constant 8 : index
    %c0_67 = arith.constant 0 : index
    %c0_68 = arith.constant 0 : index
    %50 = vector.load %arg6[%c8_66, %c0_67, %c0_68] : memref<9x1x256xf32, #tpu.memory_space<vmem>>, vector<1x1x256xf32>
    %51 = vector.shape_cast %50 : vector<1x1x256xf32> to vector<1x256xf32>
    %c0_69 = arith.constant 0 : index
    %c0_70 = arith.constant 0 : index
    %52 = vector.load %arg3[%c0_69, %c0_70] : memref<32x1xf32, #tpu.memory_space<vmem>>, vector<32x1xf32>
    %c0_71 = arith.constant 0 : index
    %c0_72 = arith.constant 0 : index
    %53 = vector.load %arg5[%c0_71, %c0_72] : memref<32x1xf32, #tpu.memory_space<vmem>>, vector<32x1xf32>
    %cst = arith.constant 0.000000e+00 : f32
    %54 = vector.broadcast %cst : f32 to vector<32x1xf32>
    %cst_73 = arith.constant 0.000000e+00 : f32
    %55 = vector.broadcast %cst_73 : f32 to vector<32x1xf32>
    %c0_74 = arith.constant 0 : index
    %c0_75 = arith.constant 0 : index
    %c0_76 = arith.constant 0 : index
    %56 = vector.load %arg1[%c0_74, %c0_75, %c0_76] : memref<1x4x256xf32, #tpu.memory_space<vmem>>, vector<1x4x256xf32>
    %57 = vector.shape_cast %56 : vector<1x4x256xf32> to vector<4x256xf32>
    %c17_i32 = arith.constant 17 : i32
    %58 = tpu.dynamic_rotate %57 by %c17_i32 dim 1 : vector<4x256xf32>, i32 -> vector<4x256xf32>
    %59 = vector.broadcast %37 : vector<1x256xf32> to vector<4x256xf32>
    %60 = arith.mulf %58, %59 : vector<4x256xf32>
    %61 = arith.truncf %60 : vector<4x256xf32> to vector<4x256xbf16>
    %cst_77 = arith.constant dense<0.000000e+00> : vector<32x256xf32>
    %62 = tpu.matmul %1, %61, %cst_77 {dimension_numbers = #tpu.dot_dimension_numbers<[1], [0], [0], [1], [0, 0, 1, 1], [], []>} : vector<32x4xbf16>, vector<4x256xbf16>, vector<32x256xf32> -> vector<32x256xf32>
    %c16_i32 = arith.constant 16 : i32
    %63 = tpu.dynamic_rotate %57 by %c16_i32 dim 1 : vector<4x256xf32>, i32 -> vector<4x256xf32>
    %64 = vector.broadcast %39 : vector<1x256xf32> to vector<4x256xf32>
    %65 = arith.mulf %63, %64 : vector<4x256xf32>
    %66 = arith.truncf %65 : vector<4x256xf32> to vector<4x256xbf16>
    %cst_78 = arith.constant dense<0.000000e+00> : vector<32x256xf32>
    %67 = tpu.matmul %3, %66, %cst_78 {dimension_numbers = #tpu.dot_dimension_numbers<[1], [0], [0], [1], [0, 0, 1, 1], [], []>} : vector<32x4xbf16>, vector<4x256xbf16>, vector<32x256xf32> -> vector<32x256xf32>
    %68 = arith.addf %62, %67 : vector<32x256xf32>
    %c15_i32 = arith.constant 15 : i32
    %69 = tpu.dynamic_rotate %57 by %c15_i32 dim 1 : vector<4x256xf32>, i32 -> vector<4x256xf32>
    %70 = vector.broadcast %41 : vector<1x256xf32> to vector<4x256xf32>
    %71 = arith.mulf %69, %70 : vector<4x256xf32>
    %72 = arith.truncf %71 : vector<4x256xf32> to vector<4x256xbf16>
    %cst_79 = arith.constant dense<0.000000e+00> : vector<32x256xf32>
    %73 = tpu.matmul %5, %72, %cst_79 {dimension_numbers = #tpu.dot_dimension_numbers<[1], [0], [0], [1], [0, 0, 1, 1], [], []>} : vector<32x4xbf16>, vector<4x256xbf16>, vector<32x256xf32> -> vector<32x256xf32>
    %74 = arith.addf %68, %73 : vector<32x256xf32>
    %c1_i32 = arith.constant 1 : i32
    %75 = tpu.dynamic_rotate %57 by %c1_i32 dim 1 : vector<4x256xf32>, i32 -> vector<4x256xf32>
    %76 = vector.broadcast %43 : vector<1x256xf32> to vector<4x256xf32>
    %77 = arith.mulf %75, %76 : vector<4x256xf32>
    %78 = arith.truncf %77 : vector<4x256xf32> to vector<4x256xbf16>
    %cst_80 = arith.constant dense<0.000000e+00> : vector<32x256xf32>
    %79 = tpu.matmul %7, %78, %cst_80 {dimension_numbers = #tpu.dot_dimension_numbers<[1], [0], [0], [1], [0, 0, 1, 1], [], []>} : vector<32x4xbf16>, vector<4x256xbf16>, vector<32x256xf32> -> vector<32x256xf32>
    %80 = arith.addf %74, %79 : vector<32x256xf32>
    %81 = arith.truncf %57 : vector<4x256xf32> to vector<4x256xbf16>
    %cst_81 = arith.constant dense<0.000000e+00> : vector<32x256xf32>
    %82 = tpu.matmul %9, %81, %cst_81 {dimension_numbers = #tpu.dot_dimension_numbers<[1], [0], [0], [1], [0, 0, 1, 1], [], []>} : vector<32x4xbf16>, vector<4x256xbf16>, vector<32x256xf32> -> vector<32x256xf32>
    %83 = arith.addf %80, %82 : vector<32x256xf32>
    %c255_i32 = arith.constant 255 : i32
    %84 = tpu.dynamic_rotate %57 by %c255_i32 dim 1 : vector<4x256xf32>, i32 -> vector<4x256xf32>
    %85 = vector.broadcast %45 : vector<1x256xf32> to vector<4x256xf32>
    %86 = arith.mulf %84, %85 : vector<4x256xf32>
    %87 = arith.truncf %86 : vector<4x256xf32> to vector<4x256xbf16>
    %cst_82 = arith.constant dense<0.000000e+00> : vector<32x256xf32>
    %88 = tpu.matmul %11, %87, %cst_82 {dimension_numbers = #tpu.dot_dimension_numbers<[1], [0], [0], [1], [0, 0, 1, 1], [], []>} : vector<32x4xbf16>, vector<4x256xbf16>, vector<32x256xf32> -> vector<32x256xf32>
    %89 = arith.addf %83, %88 : vector<32x256xf32>
    %c241_i32 = arith.constant 241 : i32
    %90 = tpu.dynamic_rotate %57 by %c241_i32 dim 1 : vector<4x256xf32>, i32 -> vector<4x256xf32>
    %91 = vector.broadcast %47 : vector<1x256xf32> to vector<4x256xf32>
    %92 = arith.mulf %90, %91 : vector<4x256xf32>
    %93 = arith.truncf %92 : vector<4x256xf32> to vector<4x256xbf16>
    %cst_83 = arith.constant dense<0.000000e+00> : vector<32x256xf32>
    %94 = tpu.matmul %13, %93, %cst_83 {dimension_numbers = #tpu.dot_dimension_numbers<[1], [0], [0], [1], [0, 0, 1, 1], [], []>} : vector<32x4xbf16>, vector<4x256xbf16>, vector<32x256xf32> -> vector<32x256xf32>
    %95 = arith.addf %89, %94 : vector<32x256xf32>
    %c240_i32 = arith.constant 240 : i32
    %96 = tpu.dynamic_rotate %57 by %c240_i32 dim 1 : vector<4x256xf32>, i32 -> vector<4x256xf32>
    %97 = vector.broadcast %49 : vector<1x256xf32> to vector<4x256xf32>
    %98 = arith.mulf %96, %97 : vector<4x256xf32>
    %99 = arith.truncf %98 : vector<4x256xf32> to vector<4x256xbf16>
    %cst_84 = arith.constant dense<0.000000e+00> : vector<32x256xf32>
    %100 = tpu.matmul %15, %99, %cst_84 {dimension_numbers = #tpu.dot_dimension_numbers<[1], [0], [0], [1], [0, 0, 1, 1], [], []>} : vector<32x4xbf16>, vector<4x256xbf16>, vector<32x256xf32> -> vector<32x256xf32>
    %101 = arith.addf %95, %100 : vector<32x256xf32>
    %c239_i32 = arith.constant 239 : i32
    %102 = tpu.dynamic_rotate %57 by %c239_i32 dim 1 : vector<4x256xf32>, i32 -> vector<4x256xf32>
    %103 = vector.broadcast %51 : vector<1x256xf32> to vector<4x256xf32>
    %104 = arith.mulf %102, %103 : vector<4x256xf32>
    %105 = arith.truncf %104 : vector<4x256xf32> to vector<4x256xbf16>
    %cst_85 = arith.constant dense<0.000000e+00> : vector<32x256xf32>
    %106 = tpu.matmul %17, %105, %cst_85 {dimension_numbers = #tpu.dot_dimension_numbers<[1], [0], [0], [1], [0, 0, 1, 1], [], []>} : vector<32x4xbf16>, vector<4x256xbf16>, vector<32x256xf32> -> vector<32x256xf32>
    %107 = arith.addf %101, %106 : vector<32x256xf32>
    %108 = vector.broadcast %52 : vector<32x1xf32> to vector<32x256xf32>
    %109 = arith.addf %107, %108 : vector<32x256xf32>
    %cst_86 = arith.constant 0.000000e+00 : f32
    %110 = vector.broadcast %cst_86 : f32 to vector<32x256xf32>
    %111 = arith.maximumf %109, %110 : vector<32x256xf32>
    %c17_i32_87 = arith.constant 17 : i32
    %112 = tpu.dynamic_rotate %111 by %c17_i32_87 dim 1 : vector<32x256xf32>, i32 -> vector<32x256xf32>
    %113 = vector.broadcast %37 : vector<1x256xf32> to vector<32x256xf32>
    %114 = arith.mulf %112, %113 : vector<32x256xf32>
    %115 = arith.truncf %114 : vector<32x256xf32> to vector<32x256xbf16>
    %cst_88 = arith.constant dense<0.000000e+00> : vector<32x256xf32>
    %116 = tpu.matmul %19, %115, %cst_88 {dimension_numbers = #tpu.dot_dimension_numbers<[1], [0], [0], [1], [0, 0, 1, 1], [], []>} : vector<32x32xbf16>, vector<32x256xbf16>, vector<32x256xf32> -> vector<32x256xf32>
    %c16_i32_89 = arith.constant 16 : i32
    %117 = tpu.dynamic_rotate %111 by %c16_i32_89 dim 1 : vector<32x256xf32>, i32 -> vector<32x256xf32>
    %118 = vector.broadcast %39 : vector<1x256xf32> to vector<32x256xf32>
    %119 = arith.mulf %117, %118 : vector<32x256xf32>
    %120 = arith.truncf %119 : vector<32x256xf32> to vector<32x256xbf16>
    %cst_90 = arith.constant dense<0.000000e+00> : vector<32x256xf32>
    %121 = tpu.matmul %21, %120, %cst_90 {dimension_numbers = #tpu.dot_dimension_numbers<[1], [0], [0], [1], [0, 0, 1, 1], [], []>} : vector<32x32xbf16>, vector<32x256xbf16>, vector<32x256xf32> -> vector<32x256xf32>
    %122 = arith.addf %116, %121 : vector<32x256xf32>
    %c15_i32_91 = arith.constant 15 : i32
    %123 = tpu.dynamic_rotate %111 by %c15_i32_91 dim 1 : vector<32x256xf32>, i32 -> vector<32x256xf32>
    %124 = vector.broadcast %41 : vector<1x256xf32> to vector<32x256xf32>
    %125 = arith.mulf %123, %124 : vector<32x256xf32>
    %126 = arith.truncf %125 : vector<32x256xf32> to vector<32x256xbf16>
    %cst_92 = arith.constant dense<0.000000e+00> : vector<32x256xf32>
    %127 = tpu.matmul %23, %126, %cst_92 {dimension_numbers = #tpu.dot_dimension_numbers<[1], [0], [0], [1], [0, 0, 1, 1], [], []>} : vector<32x32xbf16>, vector<32x256xbf16>, vector<32x256xf32> -> vector<32x256xf32>
    %128 = arith.addf %122, %127 : vector<32x256xf32>
    %c1_i32_93 = arith.constant 1 : i32
    %129 = tpu.dynamic_rotate %111 by %c1_i32_93 dim 1 : vector<32x256xf32>, i32 -> vector<32x256xf32>
    %130 = vector.broadcast %43 : vector<1x256xf32> to vector<32x256xf32>
    %131 = arith.mulf %129, %130 : vector<32x256xf32>
    %132 = arith.truncf %131 : vector<32x256xf32> to vector<32x256xbf16>
    %cst_94 = arith.constant dense<0.000000e+00> : vector<32x256xf32>
    %133 = tpu.matmul %25, %132, %cst_94 {dimension_numbers = #tpu.dot_dimension_numbers<[1], [0], [0], [1], [0, 0, 1, 1], [], []>} : vector<32x32xbf16>, vector<32x256xbf16>, vector<32x256xf32> -> vector<32x256xf32>
    %134 = arith.addf %128, %133 : vector<32x256xf32>
    %135 = arith.truncf %111 : vector<32x256xf32> to vector<32x256xbf16>
    %cst_95 = arith.constant dense<0.000000e+00> : vector<32x256xf32>
    %136 = tpu.matmul %27, %135, %cst_95 {dimension_numbers = #tpu.dot_dimension_numbers<[1], [0], [0], [1], [0, 0, 1, 1], [], []>} : vector<32x32xbf16>, vector<32x256xbf16>, vector<32x256xf32> -> vector<32x256xf32>
    %137 = arith.addf %134, %136 : vector<32x256xf32>
    %c255_i32_96 = arith.constant 255 : i32
    %138 = tpu.dynamic_rotate %111 by %c255_i32_96 dim 1 : vector<32x256xf32>, i32 -> vector<32x256xf32>
    %139 = vector.broadcast %45 : vector<1x256xf32> to vector<32x256xf32>
    %140 = arith.mulf %138, %139 : vector<32x256xf32>
    %141 = arith.truncf %140 : vector<32x256xf32> to vector<32x256xbf16>
    %cst_97 = arith.constant dense<0.000000e+00> : vector<32x256xf32>
    %142 = tpu.matmul %29, %141, %cst_97 {dimension_numbers = #tpu.dot_dimension_numbers<[1], [0], [0], [1], [0, 0, 1, 1], [], []>} : vector<32x32xbf16>, vector<32x256xbf16>, vector<32x256xf32> -> vector<32x256xf32>
    %143 = arith.addf %137, %142 : vector<32x256xf32>
    %c241_i32_98 = arith.constant 241 : i32
    %144 = tpu.dynamic_rotate %111 by %c241_i32_98 dim 1 : vector<32x256xf32>, i32 -> vector<32x256xf32>
    %145 = vector.broadcast %47 : vector<1x256xf32> to vector<32x256xf32>
    %146 = arith.mulf %144, %145 : vector<32x256xf32>
    %147 = arith.truncf %146 : vector<32x256xf32> to vector<32x256xbf16>
    %cst_99 = arith.constant dense<0.000000e+00> : vector<32x256xf32>
    %148 = tpu.matmul %31, %147, %cst_99 {dimension_numbers = #tpu.dot_dimension_numbers<[1], [0], [0], [1], [0, 0, 1, 1], [], []>} : vector<32x32xbf16>, vector<32x256xbf16>, vector<32x256xf32> -> vector<32x256xf32>
    %149 = arith.addf %143, %148 : vector<32x256xf32>
    %c240_i32_100 = arith.constant 240 : i32
    %150 = tpu.dynamic_rotate %111 by %c240_i32_100 dim 1 : vector<32x256xf32>, i32 -> vector<32x256xf32>
    %151 = vector.broadcast %49 : vector<1x256xf32> to vector<32x256xf32>
    %152 = arith.mulf %150, %151 : vector<32x256xf32>
    %153 = arith.truncf %152 : vector<32x256xf32> to vector<32x256xbf16>
    %cst_101 = arith.constant dense<0.000000e+00> : vector<32x256xf32>
    %154 = tpu.matmul %33, %153, %cst_101 {dimension_numbers = #tpu.dot_dimension_numbers<[1], [0], [0], [1], [0, 0, 1, 1], [], []>} : vector<32x32xbf16>, vector<32x256xbf16>, vector<32x256xf32> -> vector<32x256xf32>
    %155 = arith.addf %149, %154 : vector<32x256xf32>
    %c239_i32_102 = arith.constant 239 : i32
    %156 = tpu.dynamic_rotate %111 by %c239_i32_102 dim 1 : vector<32x256xf32>, i32 -> vector<32x256xf32>
    %157 = vector.broadcast %51 : vector<1x256xf32> to vector<32x256xf32>
    %158 = arith.mulf %156, %157 : vector<32x256xf32>
    %159 = arith.truncf %158 : vector<32x256xf32> to vector<32x256xbf16>
    %cst_103 = arith.constant dense<0.000000e+00> : vector<32x256xf32>
    %160 = tpu.matmul %35, %159, %cst_103 {dimension_numbers = #tpu.dot_dimension_numbers<[1], [0], [0], [1], [0, 0, 1, 1], [], []>} : vector<32x32xbf16>, vector<32x256xbf16>, vector<32x256xf32> -> vector<32x256xf32>
    %161 = arith.addf %155, %160 : vector<32x256xf32>
    %162 = vector.broadcast %53 : vector<32x1xf32> to vector<32x256xf32>
    %163 = arith.addf %161, %162 : vector<32x256xf32>
    %c0_104 = arith.constant 0 : index
    %c0_105 = arith.constant 0 : index
    %c0_106 = arith.constant 0 : index
    %164 = vector.load %arg7[%c0_104, %c0_105, %c0_106] : memref<1x32x256xf32, #tpu.memory_space<vmem>>, vector<1x32x256xf32>
    %165 = vector.shape_cast %164 : vector<1x32x256xf32> to vector<32x256xf32>
    %166 = vector.shape_cast %163 : vector<32x256xf32> to vector<1x32x256xf32>
    tpu.vector_store %arg7[%c0_104, %c0_105, %c0_106], %166 {strides = array<i32>} : memref<1x32x256xf32, #tpu.memory_space<vmem>>, vector<1x32x256xf32>,
    %cst_107 = arith.constant dense<0.000000e+00> : vector<32xf32>
    %167 = vector.multi_reduction <add>, %163, %cst_107 [1] : vector<32x256xf32> to vector<32xf32>
    %168 = vector.shape_cast %167 : vector<32xf32> to vector<32x1xf32>
    %169 = arith.addf %54, %168 : vector<32x1xf32>
    %170 = arith.mulf %163, %163 : vector<32x256xf32>
    %cst_108 = arith.constant dense<0.000000e+00> : vector<32xf32>
    %171 = vector.multi_reduction <add>, %170, %cst_108 [1] : vector<32x256xf32> to vector<32xf32>
    %172 = vector.shape_cast %171 : vector<32xf32> to vector<32x1xf32>
    %173 = arith.addf %55, %172 : vector<32x1xf32>
    %174 = vector.shape_cast %169 : vector<32x1xf32> to vector<1x32x1xf32>
    %c0_109 = arith.constant 0 : index
    %c0_110 = arith.constant 0 : index
    %c0_111 = arith.constant 0 : index
    %175 = vector.load %arg8[%c0_109, %c0_110, %c0_111] : memref<1x32x1xf32, #tpu.memory_space<vmem>>, vector<1x32x1xf32>
    tpu.vector_store %arg8[%c0_109, %c0_110, %c0_111], %174 {strides = array<i32>} : memref<1x32x1xf32, #tpu.memory_space<vmem>>, vector<1x32x1xf32>,
    %176 = vector.shape_cast %173 : vector<32x1xf32> to vector<1x32x1xf32>
    %c0_112 = arith.constant 0 : index
    %c0_113 = arith.constant 0 : index
    %c0_114 = arith.constant 0 : index
    %177 = vector.load %arg9[%c0_112, %c0_113, %c0_114] : memref<1x32x1xf32, #tpu.memory_space<vmem>>, vector<1x32x1xf32>
    tpu.vector_store %arg9[%c0_112, %c0_113, %c0_114], %176 {strides = array<i32>} : memref<1x32x1xf32, #tpu.memory_space<vmem>>, vector<1x32x1xf32>,
    return
  }
  func.func @transform_0(%arg0: i32) -> (i32, i32, i32) {
    %c0_i32 = arith.constant 0 : i32
    %c0_i32_0 = arith.constant 0 : i32
    %c0_i32_1 = arith.constant 0 : i32
    return %arg0, %c0_i32, %c0_i32_0 : i32, i32, i32
  }
  func.func @transform_1(%arg0: i32) -> (i32, i32, i32) {
    %c0_i32 = arith.constant 0 : i32
    %c0_i32_0 = arith.constant 0 : i32
    %c0_i32_1 = arith.constant 0 : i32
    %c0_i32_2 = arith.constant 0 : i32
    return %c0_i32, %c0_i32_0, %c0_i32_1 : i32, i32, i32
  }
  func.func @transform_2(%arg0: i32) -> (i32, i32) {
    %c0_i32 = arith.constant 0 : i32
    %c0_i32_0 = arith.constant 0 : i32
    %c0_i32_1 = arith.constant 0 : i32
    return %c0_i32, %c0_i32_0 : i32, i32
  }
  func.func @transform_3(%arg0: i32) -> (i32, i32, i32) {
    %c0_i32 = arith.constant 0 : i32
    %c0_i32_0 = arith.constant 0 : i32
    %c0_i32_1 = arith.constant 0 : i32
    %c0_i32_2 = arith.constant 0 : i32
    return %c0_i32, %c0_i32_0, %c0_i32_1 : i32, i32, i32
  }
  func.func @transform_4(%arg0: i32) -> (i32, i32) {
    %c0_i32 = arith.constant 0 : i32
    %c0_i32_0 = arith.constant 0 : i32
    %c0_i32_1 = arith.constant 0 : i32
    return %c0_i32, %c0_i32_0 : i32, i32
  }
  func.func @transform_5(%arg0: i32) -> (i32, i32, i32) {
    %c0_i32 = arith.constant 0 : i32
    %c0_i32_0 = arith.constant 0 : i32
    %c0_i32_1 = arith.constant 0 : i32
    %c0_i32_2 = arith.constant 0 : i32
    return %c0_i32, %c0_i32_0, %c0_i32_1 : i32, i32, i32
  }
  func.func @transform_6(%arg0: i32) -> (i32, i32, i32) {
    %c0_i32 = arith.constant 0 : i32
    %c0_i32_0 = arith.constant 0 : i32
    %c0_i32_1 = arith.constant 0 : i32
    return %arg0, %c0_i32, %c0_i32_0 : i32, i32, i32
  }
  func.func @transform_7(%arg0: i32) -> (i32, i32, i32) {
    %c0_i32 = arith.constant 0 : i32
    %c0_i32_0 = arith.constant 0 : i32
    %c0_i32_1 = arith.constant 0 : i32
    return %arg0, %c0_i32, %c0_i32_0 : i32, i32, i32
  }
  func.func @transform_8(%arg0: i32) -> (i32, i32, i32) {
    %c0_i32 = arith.constant 0 : i32
    %c0_i32_0 = arith.constant 0 : i32
    %c0_i32_1 = arith.constant 0 : i32
    return %arg0, %c0_i32, %c0_i32_0 : i32, i32, i32
  }
}

module attributes {stable_mosaic.version = 11 : i64} {
  func.func @_bn_relu_pool_kernel(%arg0: i32, %arg1: memref<1x32x256xf32, #tpu.memory_space<vmem>>, %arg2: memref<32x1xf32, #tpu.memory_space<vmem>>, %arg3: memref<32x1xf32, #tpu.memory_space<vmem>>, %arg4: memref<256x64xf32, #tpu.memory_space<vmem>>, %arg5: memref<1x32x256xf32, #tpu.memory_space<vmem>>, %arg6: memref<1x32x64xf32, #tpu.memory_space<vmem>>) attributes {dimension_semantics = [#tpu.dimension_semantics<parallel>], iteration_bounds = array<i64: 2>, scalar_prefetch = 0 : i64, scratch_operands = 0 : i64, tpu.core_type = #tpu.core_type<tc>, window_params = [{transform_indices = @transform_0, window_bounds = array<i64: 1, 32, 256>}, {pipeline_mode = #tpu.pipeline_mode<synchronous>, transform_indices = @transform_1, window_bounds = array<i64: 32, 1>}, {pipeline_mode = #tpu.pipeline_mode<synchronous>, transform_indices = @transform_2, window_bounds = array<i64: 32, 1>}, {pipeline_mode = #tpu.pipeline_mode<synchronous>, transform_indices = @transform_3, window_bounds = array<i64: 256, 64>}, {transform_indices = @transform_4, window_bounds = array<i64: 1, 32, 256>}, {transform_indices = @transform_5, window_bounds = array<i64: 1, 32, 64>}]} {
    %c0 = arith.constant 0 : index
    %c0_0 = arith.constant 0 : index
    %0 = vector.load %arg2[%c0, %c0_0] : memref<32x1xf32, #tpu.memory_space<vmem>>, vector<32x1xf32>
    %c0_1 = arith.constant 0 : index
    %c0_2 = arith.constant 0 : index
    %1 = vector.load %arg3[%c0_1, %c0_2] : memref<32x1xf32, #tpu.memory_space<vmem>>, vector<32x1xf32>
    %c0_3 = arith.constant 0 : index
    %c0_4 = arith.constant 0 : index
    %2 = vector.load %arg4[%c0_3, %c0_4] : memref<256x64xf32, #tpu.memory_space<vmem>>, vector<256x64xf32>
    %c0_5 = arith.constant 0 : index
    %c0_6 = arith.constant 0 : index
    %c0_7 = arith.constant 0 : index
    %3 = vector.load %arg1[%c0_5, %c0_6, %c0_7] : memref<1x32x256xf32, #tpu.memory_space<vmem>>, vector<1x32x256xf32>
    %4 = vector.shape_cast %3 : vector<1x32x256xf32> to vector<32x256xf32>
    %5 = vector.broadcast %0 : vector<32x1xf32> to vector<32x256xf32>
    %6 = arith.mulf %4, %5 : vector<32x256xf32>
    %7 = vector.broadcast %1 : vector<32x1xf32> to vector<32x256xf32>
    %8 = arith.addf %6, %7 : vector<32x256xf32>
    %cst = arith.constant 0.000000e+00 : f32
    %9 = vector.broadcast %cst : f32 to vector<32x256xf32>
    %10 = arith.maximumf %8, %9 : vector<32x256xf32>
    %c0_8 = arith.constant 0 : index
    %c0_9 = arith.constant 0 : index
    %c0_10 = arith.constant 0 : index
    %11 = vector.load %arg5[%c0_8, %c0_9, %c0_10] : memref<1x32x256xf32, #tpu.memory_space<vmem>>, vector<1x32x256xf32>
    %12 = vector.shape_cast %11 : vector<1x32x256xf32> to vector<32x256xf32>
    %13 = vector.shape_cast %10 : vector<32x256xf32> to vector<1x32x256xf32>
    tpu.vector_store %arg5[%c0_8, %c0_9, %c0_10], %13 {strides = array<i32>} : memref<1x32x256xf32, #tpu.memory_space<vmem>>, vector<1x32x256xf32>,
    %c240_i32 = arith.constant 240 : i32
    %14 = tpu.dynamic_rotate %10 by %c240_i32 dim 1 : vector<32x256xf32>, i32 -> vector<32x256xf32>
    %15 = arith.maximumf %10, %14 : vector<32x256xf32>
    %c255_i32 = arith.constant 255 : i32
    %16 = tpu.dynamic_rotate %15 by %c255_i32 dim 1 : vector<32x256xf32>, i32 -> vector<32x256xf32>
    %17 = arith.maximumf %15, %16 : vector<32x256xf32>
    %cst_11 = arith.constant dense<0.000000e+00> : vector<32x64xf32>
    %18 = tpu.matmul %17, %2, %cst_11 {dimension_numbers = #tpu.dot_dimension_numbers<[1], [0], [0], [1], [0, 0, 1, 1], [], []>} : vector<32x256xf32>, vector<256x64xf32>, vector<32x64xf32> -> vector<32x64xf32>
    %c0_12 = arith.constant 0 : index
    %c0_13 = arith.constant 0 : index
    %c0_14 = arith.constant 0 : index
    %19 = vector.load %arg6[%c0_12, %c0_13, %c0_14] : memref<1x32x64xf32, #tpu.memory_space<vmem>>, vector<1x32x64xf32>
    %20 = vector.shape_cast %19 : vector<1x32x64xf32> to vector<32x64xf32>
    %21 = vector.shape_cast %18 : vector<32x64xf32> to vector<1x32x64xf32>
    tpu.vector_store %arg6[%c0_12, %c0_13, %c0_14], %21 {strides = array<i32>} : memref<1x32x64xf32, #tpu.memory_space<vmem>>, vector<1x32x64xf32>,
    return
  }
  func.func @transform_0(%arg0: i32) -> (i32, i32, i32) {
    %c0_i32 = arith.constant 0 : i32
    %c0_i32_0 = arith.constant 0 : i32
    %c0_i32_1 = arith.constant 0 : i32
    return %arg0, %c0_i32, %c0_i32_0 : i32, i32, i32
  }
  func.func @transform_1(%arg0: i32) -> (i32, i32) {
    %c0_i32 = arith.constant 0 : i32
    %c0_i32_0 = arith.constant 0 : i32
    %c0_i32_1 = arith.constant 0 : i32
    return %c0_i32, %c0_i32_0 : i32, i32
  }
  func.func @transform_2(%arg0: i32) -> (i32, i32) {
    %c0_i32 = arith.constant 0 : i32
    %c0_i32_0 = arith.constant 0 : i32
    %c0_i32_1 = arith.constant 0 : i32
    return %c0_i32, %c0_i32_0 : i32, i32
  }
  func.func @transform_3(%arg0: i32) -> (i32, i32) {
    %c0_i32 = arith.constant 0 : i32
    %c0_i32_0 = arith.constant 0 : i32
    %c0_i32_1 = arith.constant 0 : i32
    return %c0_i32, %c0_i32_0 : i32, i32
  }
  func.func @transform_4(%arg0: i32) -> (i32, i32, i32) {
    %c0_i32 = arith.constant 0 : i32
    %c0_i32_0 = arith.constant 0 : i32
    %c0_i32_1 = arith.constant 0 : i32
    return %arg0, %c0_i32, %c0_i32_0 : i32, i32, i32
  }
  func.func @transform_5(%arg0: i32) -> (i32, i32, i32) {
    %c0_i32 = arith.constant 0 : i32
    %c0_i32_0 = arith.constant 0 : i32
    %c0_i32_1 = arith.constant 0 : i32
    return %arg0, %c0_i32, %c0_i32_0 : i32, i32, i32
  }
}

</mosaic_0001>

<bundles_post_ra>
// kernel: block_forward.3
= control target key start
LH: loop header
LB: loop body
LE: loop exit
PB: predicated region body
PF: predicated region fallthrough
CT: control target
= control target key end

     0   :  { %s720_s18 = smov 0   ;;  %s972_s0 = inlined_call_operand.vmem [shape: f32[2,32,256], index: 0, kind: input, shape index: {}]   ;;  %s973_s1 = inlined_call_operand.vmem [shape: f32[32,1], index: 1, kind: input, shape index: {}]   ;;  %s974_s2 = inlined_call_operand.vmem [shape: f32[32,1], index: 2, kind: input, shape index: {}]   ;;  %s975_s3 = inlined_call_operand.vmem [shape: f32[256,64], index: 3, kind: input, shape index: {}]   ;;  %s976_s4 = inlined_call_operand.vmem [shape: f32[2,32,256], index: 4, kind: output, shape index: {0}]   ;;  %s977_s5 = inlined_call_operand.vmem [shape: f32[2,32,64], index: 5, kind: output, shape index: {1}]  }
   0x1 LB: > { %s577_s19 = sadd.s32 4294967295, %s685_s18   ;;  %p581_p0 = scmp.ge.s32.totalorder %s685_s18, 1  ;;  %s685_s18 = sphi %s720_s18, %s16_s18  }
   0x2   : > { %p190_p1 = scmp.lt.s32.totalorder %s685_s18, 3 }
   0x4   : > { %p191_p2 = pnand %p581_p0, %p190_p1 }
   0x5   : > { %p223_p3 = scmp.lt.s32.totalorder (!%p191_p2), %s577_s19, 1  ;;  %s688_s20 = smov (!%p191_p2), 112  }
   0x6   : > { %194 = sbr.rel (%p191_p2) target bundleno = 515 (0x203), region = 36  ;;  %s689_s12 = smov (!%p191_p2), 127  }
   0xb   : > { %v240_v0 = vld [vmem:[%s973_s1 + $0x10] sm:$0xff]  ;;  %v238_v1 = vld [vmem:[%s973_s1] sm:$0xff]  ;;  %v687_v2 = vmov 0   ;;  %v241_v5 = vld [vmem:[%s973_s1 + $0x18] sm:$0xff]  ;;  %s979_s19 = smov (!%p223_p3, %s577_s19), 1  ;;  %v374_v53 = vlaneseq  ;;  %vm484_vm2 = vcmask 523264  }
   0xc   : > { %637 = vset.pattern.permute.xlu1 %v687_v2  ;;  %636 = vset.pattern.permute.xlu0 %v687_v2  ;;  %v242_v3 = vld [vmem:[%s974_s2] sm:$0xff]  ;;  %v244_v4 = vld [vmem:[%s974_s2 + $0x10] sm:$0xff]  ;;  %v245_v6 = vld [vmem:[%s974_s2 + $0x18] sm:$0xff]  ;;  %s590_s11 = sshll.u32 %s979_s19, 6  ;;  %s592_s16 = sshll.u32 %s979_s19, 5 }
   0xd   : > { %298 = vperm.xlu0 %636, %v240_v0   ;;  %288 = vperm.xlu1 %637, %v238_v1   ;;  %v239_v7 = vld [vmem:[%s973_s1 + $0x8] sm:$0xff]  ;;  %s758_s14 = scalar_lea.vmem %s972_s0, %s590_s11  ;;  %s767_s17 = scalar_lea.vmem %s976_s4, %s590_s11  ;;  %v801_v54 = vand.u32 127, %v374_v53  ;;  %v261_v58 = vld [vmem:[%s975_s3 + $0x78] sm:$0xff]  ;;  %v260_v60 = vld [vmem:[%s975_s3 + $0x70] sm:$0xff] }
   0xe   : > { %638 = vset.pattern.permute.xlu2 %v687_v2  ;;  %v243_v8 = vld [vmem:[%s974_s2 + $0x8] sm:$0xff]  ;;  %v278_v9 = vld [vmem:[%s758_s14] sm:$0xff]  ;;  %v284_v24 = vld [vmem:[%s758_s14 + $0x30] sm:$0xff]  ;;  %593 = vmatpush.msra.mxu2 %v261_v58  ;;  %s237_s21 = scalar_lea.vmem %s977_s5, %s592_s16 }
   0xf   : > { %316 = vperm.xlu2 %638, %v242_v3   ;;  %v279_v10 = vld [vmem:[%s758_s14 + $0x8] sm:$0xff]  ;;  %v282_v16 = vld [vmem:[%s758_s14 + $0x20] sm:$0xff]  ;;  %v285_v25 = vld [vmem:[%s758_s14 + $0x38] sm:$0xff]  ;;  %vm376_vm0 = vcmp.lt.s32.totalorder %v801_v54, 112  ;;  %426 = vmatpush.msra.mxu0 %v261_v58  ;;  %vm409_vm1 = vcmp.lt.s32.totalorder %v801_v54, 127 }
  0x10   : > { %v283_v17 = vld [vmem:[%s758_s14 + $0x28] sm:$0xff]  ;;  %v280_v41 = vld [vmem:[%s758_s14 + $0x10] sm:$0xff]  ;;  %v281_v42 = vld [vmem:[%s758_s14 + $0x18] sm:$0xff]  ;;  %594 = vmatpush.msra.mxu2 %v260_v60 }
  0x11   : > { %v277_v59 = vld [vmem:[%s975_s3 + $0xf8] sm:$0xff]  ;;  %v276_v63 = vld [vmem:[%s975_s3 + $0xf0] sm:$0xff]  ;;  %v259_v2 = vld [vmem:[%s975_s3 + $0x68] sm:$0xff]  ;;  %427 = vmatpush.msra.mxu0 %v260_v60 }
  0x12   : > { %609 = vmatpush.msra.mxu3 %v277_v59  ;;  %v275_v3 = vld [vmem:[%s975_s3 + $0xe8] sm:$0xff]  ;;  %455 = vmatpush.msra.mxu1 %v277_v59  ;;  %v246_v53 = vld [vmem:[%s975_s3] sm:$0xff] }
  0x13   : > { %595 = vmatpush.msra.mxu2 %v259_v2  ;;  %428 = vmatpush.msra.mxu0 %v259_v2 }
  0x14   : > { %610 = vmatpush.msra.mxu3 %v276_v63  ;;  %456 = vmatpush.msra.mxu1 %v276_v63 }
  0x15   : > { %326 = vperm.xlu0 %636, %v244_v4   ;;  %303 = vperm.xlu1 %637, %v241_v5   ;;  %v258_v5 = vld [vmem:[%s975_s3 + $0x60] sm:$0xff] }
  0x16   : > { %611 = vmatpush.msra.mxu3 %v275_v3  ;;  %596 = vmatpush.msra.mxu2 %v258_v5 }
  0x17   : > { %331 = vperm.xlu2 %638, %v245_v6   ;;  %v274_v6 = vld [vmem:[%s975_s3 + $0xe0] sm:$0xff]  ;;  %457 = vmatpush.msra.mxu1 %v275_v3 }
  0x18   : > { %612 = vmatpush.msra.mxu3 %v274_v6  ;;  %429 = vmatpush.msra.mxu0 %v258_v5 }
  0x19   : > { %458 = vmatpush.msra.mxu1 %v274_v6 }
  0x1d   : > { %293 = vperm.xlu0 %636, %v239_v7   ;;  %321 = vperm.xlu1 %637, %v243_v8   ;;  %v257_v7 = vld [vmem:[%s975_s3 + $0x58] sm:$0xff] }
  0x1e   : > { %v273_v8 = vld [vmem:[%s975_s3 + $0xd8] sm:$0xff]  ;;  %597 = vmatpush.msra.mxu2 %v257_v7  ;;  %430 = vmatpush.msra.mxu0 %v257_v7 }
  0x1f   : > { %613 = vmatpush.msra.mxu3 %v273_v8  ;;  %459 = vmatpush.msra.mxu1 %v273_v8 }
  0x69   : > { %v317_v11 = vpop.permute.xlu2 %316 }
  0x71   : > { %v332_v33 = vpop.permute.xlu2 %331 }
  0x7f   : > { %v299_v12 = vpop.permute.xlu0 %298  ;;  %v289_v13 = vpop.permute.xlu1 %288 }
  0x80   : > { %v306_v14 = vmul.f32 %v289_v13, %v278_v9  ;;  %v307_v15 = vmul.f32 %v289_v13, %v279_v10  ;;  %v310_v20 = vmul.f32 %v299_v12, %v282_v16  ;;  %v311_v21 = vmul.f32 %v299_v12, %v283_v17  ;;  %v256_v10 = vld [vmem:[%s975_s3 + $0x50] sm:$0xff] }
  0x81   : > { %598 = vmatpush.msra.mxu2 %v256_v10  ;;  %431 = vmatpush.msra.mxu0 %v256_v10 }
  0x82   : > { %v334_v18 = vadd.f32 %v317_v11, %v306_v14  ;;  %v335_v19 = vadd.f32 %v317_v11, %v307_v15  ;;  %v272_v11 = vld [vmem:[%s975_s3 + $0xd0] sm:$0xff]  ;;  %v255_v14 = vld [vmem:[%s975_s3 + $0x48] sm:$0xff] }
  0x83   : > { %v271_v15 = vld [vmem:[%s975_s3 + $0xc8] sm:$0xff]  ;;  %614 = vmatpush.msra.mxu3 %v272_v11  ;;  %599 = vmatpush.msra.mxu2 %v255_v14 }
  0x84   : > { %v769_v22 = vmax.f32 %v334_v18, 0.0  ;;  %v771_v23 = vmax.f32 %v335_v19, 0.0  ;;  %460 = vmatpush.msra.mxu1 %v272_v11  ;;  %432 = vmatpush.msra.mxu0 %v255_v14 }
  0x85   : > { %615 = vmatpush.msra.mxu3 %v271_v15 }
  0x86   : > { %350 = vst [vmem:[%s767_s17] sm:$0xff] %v769_v22  ;;  %v644_v26 = vpack.i.bf16 %v771_v23, %v769_v22  ;;  %461 = vmatpush.msra.mxu1 %v271_v15 }
  0x87   : > { %351 = vst [vmem:[%s767_s17 + $0x8] sm:$0xff] %v771_v23  ;;  %v327_v27 = vpop.permute.xlu0 %326  ;;  %v304_v28 = vpop.permute.xlu1 %303 }
  0x88   : > { %v338_v29 = vadd.f32 %v327_v27, %v310_v20  ;;  %v339_v30 = vadd.f32 %v327_v27, %v311_v21  ;;  %v312_v31 = vmul.f32 %v304_v28, %v284_v24  ;;  %v313_v32 = vmul.f32 %v304_v28, %v285_v25  ;;  %645 = vrot.lane.b32.xlu0 %v644_v26, %s688_s20  ;;  %v254_v20 = vld [vmem:[%s975_s3 + $0x40] sm:$0xff]  ;;  %v253_v25 = vld [vmem:[%s975_s3 + $0x38] sm:$0xff]  ;;  %v252_v28 = vld [vmem:[%s975_s3 + $0x30] sm:$0xff] }
  0x89   : > { %v270_v21 = vld [vmem:[%s975_s3 + $0xc0] sm:$0xff]  ;;  %v269_v26 = vld [vmem:[%s975_s3 + $0xb8] sm:$0xff]  ;;  %600 = vmatpush.msra.mxu2 %v254_v20  ;;  %433 = vmatpush.msra.mxu0 %v254_v20 }
  0x8a   : > { %v346_v34 = vmax.f32 %v338_v29, 0.0  ;;  %v347_v35 = vmax.f32 %v339_v30, 0.0  ;;  %v340_v36 = vadd.f32 %v332_v33, %v312_v31  ;;  %v341_v37 = vadd.f32 %v332_v33, %v313_v32  ;;  %616 = vmatpush.msra.mxu3 %v270_v21  ;;  %v268_v29 = vld [vmem:[%s975_s3 + $0xb0] sm:$0xff]  ;;  %v251_v32 = vld [vmem:[%s975_s3 + $0x28] sm:$0xff]  ;;  %462 = vmatpush.msra.mxu1 %v270_v21 }
  0x8b   : > { %601 = vmatpush.msra.mxu2 %v253_v25  ;;  %v267_v33 = vld [vmem:[%s975_s3 + $0xa8] sm:$0xff]  ;;  %434 = vmatpush.msra.mxu0 %v253_v25 }
  0x8c   : > { %354 = vst [vmem:[%s767_s17 + $0x20] sm:$0xff] %v346_v34  ;;  %v783_v38 = vmax.f32 %v340_v36, 0.0  ;;  %v785_v39 = vmax.f32 %v341_v37, 0.0  ;;  %v639_v40 = vpack.i.bf16 %v347_v35, %v346_v34  ;;  %617 = vmatpush.msra.mxu3 %v269_v26  ;;  %463 = vmatpush.msra.mxu1 %v269_v26 }
  0x8d   : > { %355 = vst [vmem:[%s767_s17 + $0x28] sm:$0xff] %v347_v35  ;;  %602 = vmatpush.msra.mxu2 %v252_v28  ;;  %435 = vmatpush.msra.mxu0 %v252_v28 }
  0x8e   : > { %356 = vst [vmem:[%s767_s17 + $0x30] sm:$0xff] %v783_v38  ;;  %640 = vrot.lane.b32.xlu2 %v639_v40, %s688_s20  ;;  %v649_v43 = vpack.i.bf16 %v785_v39, %v783_v38  ;;  %618 = vmatpush.msra.mxu3 %v268_v29  ;;  %v250_v40 = vld [vmem:[%s975_s3 + $0x20] sm:$0xff] }
  0x8f   : > { %357 = vst [vmem:[%s767_s17 + $0x38] sm:$0xff] %v785_v39  ;;  %v294_v44 = vpop.permute.xlu0 %293  ;;  %v322_v47 = vpop.permute.xlu1 %321  ;;  %603 = vmatpush.msra.mxu2 %v251_v32  ;;  %464 = vmatpush.msra.mxu1 %v268_v29 }
  0x90   : > { %v308_v45 = vmul.f32 %v294_v44, %v280_v41  ;;  %v309_v46 = vmul.f32 %v294_v44, %v281_v42  ;;  %650 = vrot.lane.b32.xlu1 %v649_v43, %s688_s20  ;;  %v266_v41 = vld [vmem:[%s975_s3 + $0xa0] sm:$0xff]  ;;  %619 = vmatpush.msra.mxu3 %v267_v33 }
  0x91   : > { %604 = vmatpush.msra.mxu2 %v250_v40  ;;  %436 = vmatpush.msra.mxu0 %v251_v32 }
  0x92   : > { %v336_v48 = vadd.f32 %v322_v47, %v308_v45  ;;  %v337_v49 = vadd.f32 %v322_v47, %v309_v46  ;;  %620 = vmatpush.msra.mxu3 %v266_v41  ;;  %465 = vmatpush.msra.mxu1 %v267_v33 }
  0x93   : > { %437 = vmatpush.msra.mxu0 %v250_v40 }
  0x94   : > { %v344_v50 = vmax.f32 %v336_v48, 0.0  ;;  %v345_v51 = vmax.f32 %v337_v49, 0.0  ;;  %466 = vmatpush.msra.mxu1 %v266_v41 }
  0x96   : > { %352 = vst [vmem:[%s767_s17 + $0x10] sm:$0xff] %v344_v50  ;;  %v654_v52 = vpack.i.bf16 %v345_v51, %v344_v50 }
  0x97   : > { %353 = vst [vmem:[%s767_s17 + $0x18] sm:$0xff] %v345_v51 }
  0x98   : > { %655 = vrot.lane.b32.xlu2 %v654_v52, %s688_s20  ;;  %v264_v52 = vld [vmem:[%s975_s3 + $0x90] sm:$0xff] }
  0xe8   : > { %v641_v55 = vpop.permute.xlu2 %640 }
  0xe9   : > { %v643_v56 = vunpack.i.h.bf16 %v641_v55  ;;  %v642_v57 = vunpack.i.l.bf16 %v641_v55  ;;  %v262_v55 = vld [vmem:[%s975_s3 + $0x80] sm:$0xff] }
  0xeb   : > { %v379_v61 = vsel %vm376_vm0, %v642_v57, %v643_v56  ;;  %v383_v62 = vsel %vm376_vm0, %v643_v56, %v642_v57 }
  0xec   : > { %v820_v0 = vmax.f32 %v346_v34, %v379_v61  ;;  %v822_v1 = vmax.f32 %v347_v35, %v383_v62 }
  0xee   : > { %v659_v4 = vpack.i.bf16 %v822_v1, %v820_v0 }
  0xf0   : > { %660 = vrot.lane.b32.xlu0 %v659_v4, %s689_s12 }
  0xf2   : > { %v656_v9 = vpop.permute.xlu2 %655 }
  0xf3   : > { %v658_v12 = vunpack.i.h.bf16 %v656_v9  ;;  %v657_v13 = vunpack.i.l.bf16 %v656_v9 }
  0xf5   : > { %v378_v16 = vsel %vm376_vm0, %v657_v13, %v658_v12  ;;  %v382_v17 = vsel %vm376_vm0, %v658_v12, %v657_v13 }
  0xf6   : > { %v861_v18 = vmax.f32 %v344_v50, %v378_v16  ;;  %v863_v19 = vmax.f32 %v345_v51, %v382_v17  ;;  %v248_v51 = vld [vmem:[%s975_s3 + $0x10] sm:$0xff] }
  0xf8   : > { %v674_v24 = vpack.i.bf16 %v863_v19, %v861_v18 }
  0xfa   : > { %675 = vrot.lane.b32.xlu0 %v674_v24, %s689_s12  ;;  %v646_v27 = vpop.permute.xlu0 %645 }
  0xfb   : > { %v648_v30 = vunpack.i.h.bf16 %v646_v27  ;;  %v647_v31 = vunpack.i.l.bf16 %v646_v27 }
  0xfd   : > { %v377_v34 = vsel %vm376_vm0, %v647_v31, %v648_v30  ;;  %v381_v35 = vsel %vm376_vm0, %v648_v30, %v647_v31 }
  0xfe   : > { %v897_v36 = vmax.f32 %v769_v22, %v377_v34  ;;  %v900_v37 = vmax.f32 %v771_v23, %v381_v35  ;;  %v249_v22 = vld [vmem:[%s975_s3 + $0x18] sm:$0xff] }
  0xff   : > { %v265_v23 = vld [vmem:[%s975_s3 + $0x98] sm:$0xff]  ;;  %605 = vmatpush.msra.mxu2 %v249_v22  ;;  %438 = vmatpush.msra.mxu0 %v249_v22 }
 0x100   : > { %v664_v42 = vpack.i.bf16 %v900_v37, %v897_v36  ;;  %621 = vmatpush.msra.mxu3 %v265_v23  ;;  %467 = vmatpush.msra.mxu1 %v265_v23 }
 0x101   : > { %606 = vmatpush.msra.mxu2 %v248_v51  ;;  %439 = vmatpush.msra.mxu0 %v248_v51 }
 0x102   : > { %v651_v43 = vpop.permute.xlu1 %650  ;;  %665 = vrot.lane.b32.xlu1 %v664_v42, %s689_s12  ;;  %622 = vmatpush.msra.mxu3 %v264_v52 }
 0x103   : > { %v653_v44 = vunpack.i.h.bf16 %v651_v43  ;;  %v652_v45 = vunpack.i.l.bf16 %v651_v43  ;;  %468 = vmatpush.msra.mxu1 %v264_v52 }
 0x105   : > { %v380_v46 = vsel %vm376_vm0, %v652_v45, %v653_v44  ;;  %v384_v47 = vsel %vm376_vm0, %v653_v44, %v652_v45 }
 0x106   : > { %v391_v48 = vmax.f32 %v783_v38, %v380_v46  ;;  %v392_v49 = vmax.f32 %v785_v39, %v384_v47  ;;  %v247_v38 = vld [vmem:[%s975_s3 + $0x8] sm:$0xff] }
 0x107   : > { %v263_v39 = vld [vmem:[%s975_s3 + $0x88] sm:$0xff]  ;;  %607 = vmatpush.msra.mxu2 %v247_v38  ;;  %440 = vmatpush.msra.mxu0 %v247_v38 }
 0x108   : > { %v669_v50 = vpack.i.bf16 %v392_v49, %v391_v48  ;;  %623 = vmatpush.msra.mxu3 %v263_v39  ;;  %469 = vmatpush.msra.mxu1 %v263_v39 }
 0x109   : > { %608 = vmatpush.msra.mxu2 %v246_v53  ;;  %441 = vmatpush.msra.mxu0 %v246_v53 }
 0x10a   : > { %670 = vrot.lane.b32.xlu2 %v669_v50, %s689_s12  ;;  %624 = vmatpush.msra.mxu3 %v262_v55 }
 0x10b   : > { %470 = vmatpush.msra.mxu1 %v262_v55 }
 0x162   : > { %v661_v56 = vpop.permute.xlu0 %660 }
 0x163   : > { %v663_v57 = vunpack.i.h.bf16 %v661_v56  ;;  %v662_v58 = vunpack.i.l.bf16 %v661_v56 }
 0x164   : > { %v671_v59 = vpop.permute.xlu2 %670 }
 0x165   : > { %v412_v60 = vsel %vm409_vm1, %v662_v58, %v663_v57  ;;  %v416_v61 = vsel %vm409_vm1, %v663_v57, %v662_v58  ;;  %v673_v2 = vunpack.i.h.bf16 %v671_v59  ;;  %v672_v3 = vunpack.i.l.bf16 %v671_v59 }
 0x166   : > { %v422_v62 = vmax.f32 %v820_v0, %v412_v60  ;;  %v423_v63 = vmax.f32 %v822_v1, %v416_v61 }
 0x167   : > { %v413_v4 = vsel %vm409_vm1, %v672_v3, %v673_v2  ;;  %v417_v5 = vsel %vm409_vm1, %v673_v2, %v672_v3 }
 0x168   : > { %448 = vmatmul.f32.vlgmr.msra.gmra.mxu2 %v422_v62  ;;  %477 = vmatmul.f32.vlgmr.msra.gmra.mxu3 %v423_v63  ;;  %v424_v6 = vmax.f32 %v391_v48, %v413_v4  ;;  %v425_v7 = vmax.f32 %v392_v49, %v417_v5 }
 0x16c   : > { %v676_v0 = vpop.permute.xlu0 %675 }
 0x16d   : > { %v678_v14 = vunpack.i.h.bf16 %v676_v0  ;;  %v677_v15 = vunpack.i.l.bf16 %v676_v0 }
 0x16f   : > { %v411_v16 = vsel %vm409_vm1, %v677_v15, %v678_v14  ;;  %v415_v17 = vsel %vm409_vm1, %v678_v14, %v677_v15 }
 0x170   : > { %451 = vmatmul.f32.gmra.mxu2 %v424_v6  ;;  %480 = vmatmul.f32.gmra.mxu3 %v425_v7  ;;  %v420_v20 = vmax.f32 %v861_v18, %v411_v16  ;;  %v421_v21 = vmax.f32 %v863_v19, %v415_v17 }
 0x174   : > { %v666_v8 = vpop.permute.xlu1 %665 }
 0x175   : > { %v668_v9 = vunpack.i.h.bf16 %v666_v8  ;;  %v667_v10 = vunpack.i.l.bf16 %v666_v8 }
 0x177   : > { %v410_v1 = vsel %vm409_vm1, %v667_v10, %v668_v9  ;;  %v414_v11 = vsel %vm409_vm1, %v668_v9, %v667_v10 }
 0x178   : > { %v418_v12 = vmax.f32 %v897_v36, %v410_v1  ;;  %v419_v13 = vmax.f32 %v900_v37, %v414_v11 }
 0x17a   : > { %442 = vmatmul.f32.vlgmr.msra.gmra.mxu0 %v418_v12  ;;  %471 = vmatmul.f32.vlgmr.msra.gmra.mxu1 %v419_v13 }
 0x182   : > { %445 = vmatmul.f32.gmra.mxu0 %v420_v20  ;;  %474 = vmatmul.f32.gmra.mxu1 %v421_v21 }
 0x1eb   : > { %v449_v24 = vpop.f32.mrf.mxu2  ;;  %v478_v25 = vpop.f32.mrf.mxu3 }
 0x1ec   : > { %v479_v26 = vadd.f32 %v478_v25, %v449_v24 }
 0x1ee   : > { %487 = vst.msk [vmem:[%s237_s21 + $0x10] sm:$0xff] %vm484_vm2, %v479_v26 }
 0x1f3   : > { %v452_v27 = vpop.f32.mrf.mxu2  ;;  %v481_v28 = vpop.f32.mrf.mxu3 }
 0x1f4   : > { %v482_v54 = vadd.f32 %v481_v28, %v452_v27 }
 0x1f6   : > { %488 = vst.msk [vmem:[%s237_s21 + $0x18] sm:$0xff] %vm484_vm2, %v482_v54 }
 0x1f7   : > { %v443_v29 = vpop.f32.mrf.mxu0  ;;  %v472_v18 = vpop.f32.mrf.mxu1 }
 0x1f8   : > { %v473_v30 = vadd.f32 %v472_v18, %v443_v29 }
 0x1fa   : > { %485 = vst.msk [vmem:[%s237_s21] sm:$0xff] %vm484_vm2, %v473_v30 }
 0x1ff   : > { %v446_v19 = vpop.f32.mrf.mxu0  ;;  %v475_v31 = vpop.f32.mrf.mxu1 }
 0x200   : > { %v476_v32 = vadd.f32 %v475_v31, %v446_v19 }
 0x202   : > { %486 = vst.msk [vmem:[%s237_s21 + $0x8] sm:$0xff] %vm484_vm2, %v476_v32 }
 0x203 PF: > { %s16_s18 = sadd.s32 1, %s685_s18  }
 0x204   : > { %p13_p4 = scmp.ge.s32.totalorder %s16_s18, 4  }
 0x206   :  { %15 = sbr.rel (!%p13_p4) target bundleno = 1 (0x1), region = 78 }

// kernel: block_forward.2
= control target key start
LH: loop header
LB: loop body
LE: loop exit
PB: predicated region body
PF: predicated region fallthrough
CT: control target
= control target key end

     0   :  { %s2721_s27 = smov 0   ;;  %s3635_s0 = inlined_call_operand.vmem [shape: f32[2,4,256], index: 0, kind: input, shape index: {}]   ;;  %s3636_s1 = inlined_call_operand.vmem [shape: bf16[9,32,4], index: 1, kind: input, shape index: {}]   ;;  %s3637_s2 = inlined_call_operand.vmem [shape: f32[32,1], index: 2, kind: input, shape index: {}]   ;;  %s3638_s3 = inlined_call_operand.vmem [shape: bf16[9,32,32], index: 3, kind: input, shape index: {}]   ;;  %s3639_s4 = inlined_call_operand.vmem [shape: f32[32,1], index: 4, kind: input, shape index: {}]   ;;  %s3640_s5 = inlined_call_operand.vmem [shape: f32[9,1,256], index: 5, kind: input, shape index: {}]   ;;  %s3641_s6 = inlined_call_operand.vmem [shape: f32[2,32,256], index: 6, kind: output, shape index: {0}]   ;;  %s3642_s7 = inlined_call_operand.vmem [shape: f32[2,32,1], index: 7, kind: output, shape index: {1}]   ;;  %s3643_s8 = inlined_call_operand.vmem [shape: f32[2,32,1], index: 8, kind: output, shape index: {2}]  }
   0x1 LB: > { %s2297_s28 = sadd.s32 4294967295, %s2665_s27   ;;  %p2301_p0 = scmp.ge.s32.totalorder %s2665_s27, 1  ;;  %s2665_s27 = sphi %s2721_s27, %s19_s27  }
   0x2   : > { %p267_p1 = scmp.lt.s32.totalorder %s2665_s27, 3 }
   0x4   : > { %p268_p2 = pnand %p2301_p0, %p267_p1 }
   0x6   : > { %271 = sbr.rel (%p268_p2) target bundleno = 1001 (0x3e9), region = 44 }
   0xb   : > { %p311_p3 = scmp.lt.s32.totalorder %s2297_s28, 1  ;;  %s2667_s11 = smov 17   ;;  %v454_v19 = vlaneseq  ;;  %v420_v22 = vld [vmem:[%s3640_s5] sm:$0x3]  ;;  %v2375_v25 = vld [vmem:[%s3640_s5 + $0x4] sm:$0x3] }
   0xc   : > { %s2668_s12 = smov 16   ;;  %s2669_s13 = smov 15   ;;  %v2760_v23 = vperm.slane %v420_v22, 0  ;;  %v2762_v24 = vperm.slane %v420_v22, 1  ;;  %v2772_v31 = vperm.slane %v2375_v25, 0  ;;  %v2774_v32 = vperm.slane %v2375_v25, 1 }
   0xd   : > { %s3705_s28 = smov (!%p311_p3, %s2297_s28), 1  ;;  %s2670_s14 = smov 1   ;;  %v2754_v21 = vand.u32 127, %v454_v19  ;;  %vm506_vm2 = vcmask 1041408   ;;  %v2374_v38 = vld [vmem:[%s3640_s5 + $0x2] sm:$0x3] }
   0xe   : > { %s2599_s29 = sshll.u32 %s3705_s28, 3  ;;  %s2671_s15 = smov 127   ;;  %3674 = vst [vmem:[#allocation2_spill] sm:$0xff] %v2760_v23  ;;  %v2603_v45 = vld [vmem:[%s3636_s1] sm:$0xff]  ;;  %v2794_v46 = vperm.slane %v2374_v38, 0  ;;  %v2796_v47 = vperm.slane %v2374_v38, 1 }
   0xf   : > { %s315_s10 = scalar_lea.vmem %s3635_s0, %s2599_s29  ;;  %s2672_s16 = smov 113   ;;  %vm456_vm0 = vcmp.lt.s32.totalorder %v2754_v21, 17  ;;  %3675 = vst [vmem:[#allocation3_spill] sm:$0xff] %v2762_v24  ;;  %vm620_vm1 = vcmp.lt.s32.totalorder %v2754_v21, 15  ;;  %vm477_vm3 = vcmp.lt.s32.totalorder %v2754_v21, 16  ;;  %vm499_vm4 = vcmask 31744  }
  0x10   : > { %v443_v0 = vld [vmem:[%s315_s10] sm:$0xff]  ;;  %s2673_s17 = smov 112   ;;  %s2674_s18 = smov 111   ;;  %3676 = vst [vmem:[#allocation4_spill] sm:$0xff] %v2772_v31  ;;  %vm709_vm5 = vcmp.lt.s32.totalorder %v2754_v21, 1  ;;  %v2605_v62 = vld [vmem:[%s3636_s1 + $0x10] sm:$0xff] }
  0x11   : > { %445 = vst [vmem:[#allocation1] ss:$2 sm:$0xff] %v443_v0  ;;  %v2376_v55 = vld [vmem:[%s3640_s5 + $0x6] sm:$0x3]  ;;  %vm873_vm6 = vcmp.lt.s32.totalorder %v2754_v21, 127  ;;  %v2610_v38 = vld [vmem:[%s3636_s1 + $0x38] sm:$0xff] }
  0x12   : > { %3677 = vst [vmem:[#allocation5_spill] sm:$0xff] %v2774_v32  ;;  %v2817_v63 = vperm.slane %v2376_v55, 0  ;;  %vm962_vm7 = vcmp.lt.s32.totalorder %v2754_v21, 113  ;;  %vm1051_vm8 = vcmp.lt.s32.totalorder %v2754_v21, 112  ;;  %vm1140_vm9 = vcmp.lt.s32.totalorder %v2754_v21, 111  ;;  %s2601_s20 = sshll.u32 %s3705_s28, 5 }
  0x13   : > { %3678 = vst [vmem:[#allocation6_spill] sm:$0xff] %v2796_v47  ;;  %vm1338_vm10 = vcmask 261120   ;;  %s325_s22 = scalar_lea.vmem %s3642_s7, %s2601_s20  ;;  %vm2167_vm11 = vcmask 7168   ;;  %s330_s25 = scalar_lea.vmem %s3643_s8, %s2601_s20 }
  0x14   : > { %3679 = vst [vmem:[#allocation7_spill] sm:$0xff] %v2817_v63 }
  0x18   : > { %v446_v1 = vld.sshfl [vmem:[#allocation1] sm:$0xff pattern:$0x75316420]  ;;  %v447_v2 = vld.sshfl [vmem:[#allocation1 + $0x8] sm:$0xff pattern:$0x75316420] }
  0x19   : > { %450 = vrot.lane.b32.xlu1 %v446_v1, %s2667_s11  ;;  %468 = vst [vmem:[#allocation1] ss:$2 sm:$0xff] %v443_v0 }
  0x20   : > { %v469_v3 = vld.sshfl [vmem:[#allocation1] sm:$0xff pattern:$0x75316420]  ;;  %v470_v4 = vld.sshfl [vmem:[#allocation1 + $0x8] sm:$0xff pattern:$0x75316420] }
  0x21   : > { %473 = vrot.lane.b32.xlu0 %v469_v3, %s2668_s12  ;;  %452 = vrot.lane.b32.xlu1 %v447_v2, %s2667_s11  ;;  %611 = vst [vmem:[#allocation1] ss:$2 sm:$0xff] %v443_v0 }
  0x28   : > { %v612_v5 = vld.sshfl [vmem:[#allocation1] sm:$0xff pattern:$0x75316420]  ;;  %v613_v6 = vld.sshfl [vmem:[#allocation1 + $0x8] sm:$0xff pattern:$0x75316420] }
  0x29   : > { %475 = vrot.lane.b32.xlu0 %v470_v4, %s2668_s12  ;;  %700 = vst [vmem:[#allocation1] ss:$2 sm:$0xff] %v443_v0  ;;  %616 = vrot.lane.b32.xlu2 %v612_v5, %s2669_s13 }
  0x30   : > { %v702_v7 = vld.sshfl [vmem:[#allocation1 + $0x8] sm:$0xff pattern:$0x75316420]  ;;  %v701_v8 = vld.sshfl [vmem:[#allocation1] sm:$0xff pattern:$0x75316420] }
  0x31   : > { %707 = vrot.lane.b32.xlu1 %v702_v7, %s2670_s14  ;;  %705 = vrot.lane.b32.xlu0 %v701_v8, %s2670_s14  ;;  %789 = vst [vmem:[#allocation1] ss:$2 sm:$0xff] %v443_v0 }
  0x32   : > { %618 = vrot.lane.b32.xlu2 %v613_v6, %s2669_s13 }
  0x38   : > { %v2743_v9 = vld.sshfl [vmem:[#allocation1] sm:$0xff pattern:$0x75316420]  ;;  %v2745_v10 = vld.sshfl [vmem:[#allocation1 + $0x8] sm:$0xff pattern:$0x75316420] }
  0x39   : > { %864 = vst [vmem:[#allocation1] ss:$2 sm:$0xff] %v443_v0 }
  0x40   : > { %v866_v11 = vld.sshfl [vmem:[#allocation1 + $0x8] sm:$0xff pattern:$0x75316420]  ;;  %v865_v12 = vld.sshfl [vmem:[#allocation1] sm:$0xff pattern:$0x75316420] }
  0x41   : > { %871 = vrot.lane.b32.xlu0 %v866_v11, %s2671_s15  ;;  %869 = vrot.lane.b32.xlu2 %v865_v12, %s2671_s15  ;;  %953 = vst [vmem:[#allocation1] ss:$2 sm:$0xff] %v443_v0  ;;  %v2604_v11 = vld [vmem:[%s3636_s1 + $0x8] sm:$0xff] }
  0x48   : > { %v954_v13 = vld.sshfl [vmem:[#allocation1] sm:$0xff pattern:$0x75316420]  ;;  %v955_v14 = vld.sshfl [vmem:[#allocation1 + $0x8] sm:$0xff pattern:$0x75316420] }
  0x49   : > { %958 = vrot.lane.b32.xlu1 %v954_v13, %s2672_s16  ;;  %1042 = vst [vmem:[#allocation1] ss:$2 sm:$0xff] %v443_v0  ;;  %960 = vrot.lane.b32.xlu2 %v955_v14, %s2672_s16  ;;  %v2606_v14 = vld [vmem:[%s3636_s1 + $0x18] sm:$0xff] }
  0x50   : > { %v1044_v15 = vld.sshfl [vmem:[#allocation1 + $0x8] sm:$0xff pattern:$0x75316420]  ;;  %v1043_v16 = vld.sshfl [vmem:[#allocation1] sm:$0xff pattern:$0x75316420] }
  0x51   : > { %1049 = vrot.lane.b32.xlu1 %v1044_v15, %s2673_s17  ;;  %1047 = vrot.lane.b32.xlu0 %v1043_v16, %s2673_s17  ;;  %1131 = vst [vmem:[#allocation1] ss:$2 sm:$0xff] %v443_v0  ;;  %v2819_v0 = vperm.slane %v2376_v55, 1  ;;  %v2377_v16 = vld [vmem:[%s3640_s5 + $0xa] sm:$0x3] }
  0x52   : > { %v2847_v19 = vperm.slane %v2377_v16, 0 }
  0x53   : > { %3680 = vst [vmem:[#allocation8_spill] sm:$0xff] %v2819_v0 }
  0x54   : > { %3681 = vst [vmem:[#allocation9_spill] sm:$0xff] %v2847_v19 }
  0x58   : > { %v1133_v17 = vld.sshfl [vmem:[#allocation1 + $0x8] sm:$0xff pattern:$0x75316420]  ;;  %v1132_v37 = vld.sshfl [vmem:[#allocation1] sm:$0xff pattern:$0x75316420] }
  0x59   : > { %1138 = vrot.lane.b32.xlu0 %v1133_v17, %s2674_s18  ;;  %1136 = vrot.lane.b32.xlu2 %v1132_v37, %s2674_s18  ;;  %v2607_v37 = vld [vmem:[%s3636_s1 + $0x20] sm:$0xff] }
  0x83   : > { %v617_v18 = vpop.permute.xlu2 %616 }
  0x8b   : > { %v451_v20 = vpop.permute.xlu1 %450 }
  0x8c   : > { %v619_v26 = vpop.permute.xlu2 %618 }
  0x8d   : > { %v621_v35 = vsel %vm620_vm1, %v617_v18, %v619_v26  ;;  %v622_v36 = vsel %vm620_vm1, %v619_v26, %v617_v18  ;;  %v794_v18 = vpack.c.bf16 %v2743_v9, %v2743_v9  ;;  %v2609_v9 = vld [vmem:[%s3636_s1 + $0x30] sm:$0xff] }
  0x8e   : > { %v628_v41 = vmul.f32 %v2772_v31, %v622_v36  ;;  %v629_v42 = vmul.f32 %v2774_v32, %v621_v35  ;;  %v795_v35 = vpack.c.bf16 %v2745_v10, %v2745_v10  ;;  %v2608_v10 = vld [vmem:[%s3636_s1 + $0x28] sm:$0xff] }
  0x8f   : > { %v813_v26 = vsel %vm506_vm2, %v794_v18, 0 }
  0x90   : > { %v630_v51 = vpack.c.bf16 %v628_v41, %v628_v41  ;;  %v631_v52 = vpack.c.bf16 %v629_v42, %v629_v42  ;;  %v816_v36 = vsel %vm506_vm2, %v795_v35, 0  ;;  %v437_v35 = vld [vmem:[%s3637_s2 + $0x10] sm:$0xff] }
  0x92   : > { %v649_v58 = vsel %vm506_vm2, %v630_v51, 0  ;;  %v652_v59 = vsel %vm506_vm2, %v631_v52, 0 }
  0x93   : > { %v474_v27 = vpop.permute.xlu0 %473  ;;  %v453_v28 = vpop.permute.xlu1 %452 }
  0x94   : > { %v457_v29 = vsel %vm456_vm0, %v451_v20, %v453_v28  ;;  %v458_v30 = vsel %vm456_vm0, %v453_v28, %v451_v20  ;;  %v2849_v20 = vperm.slane %v2377_v16, 1  ;;  %v2617_v16 = vld [vmem:[%s3636_s1 + $0x70] sm:$0xff] }
  0x95   : > { %v464_v33 = vmul.f32 %v2760_v23, %v458_v30  ;;  %v465_v34 = vmul.f32 %v2762_v24, %v457_v29 }
  0x96   : > { %3682 = vst [vmem:[#allocation10_spill] sm:$0xff] %v2849_v20 }
  0x97   : > { %v466_v39 = vpack.c.bf16 %v464_v33, %v464_v33  ;;  %v467_v40 = vpack.c.bf16 %v465_v34, %v465_v34 }
  0x99   : > { %v568_v43 = vsel %vm506_vm2, %v466_v39, 0  ;;  %v571_v44 = vsel %vm506_vm2, %v467_v40, 0  ;;  %v2378_v40 = vld [vmem:[%s3640_s5 + $0xc] sm:$0x3] }
  0x9a   : > { %580 = vmatpush.bf16.msra.mxu2 %v568_v43  ;;  %599 = vmatpush.bf16.msra.mxu3 %v571_v44  ;;  %v2379_v43 = vld [vmem:[%s3640_s5 + $0xe] sm:$0x3]  ;;  %v2891_v44 = vperm.slane %v2378_v40, 0 }
  0x9b   : > { %v476_v48 = vpop.permute.xlu0 %475  ;;  %v870_v17 = vpop.permute.xlu2 %869  ;;  %v2899_v51 = vperm.slane %v2379_v43, 0  ;;  %v2901_v52 = vperm.slane %v2379_v43, 1 }
  0x9c   : > { %v478_v49 = vsel %vm477_vm3, %v474_v27, %v476_v48  ;;  %v479_v50 = vsel %vm477_vm3, %v476_v48, %v474_v27  ;;  %3683 = vst [vmem:[#allocation11_spill] sm:$0xff] %v2891_v44 }
  0x9d   : > { %2401 = vmatmul.msk.bf16.vlgmr.msra.gmra.mxu2 %vm499_vm4, %v2603_v45  ;;  %2403 = vmatmul.msk.bf16.vlgmr.msra.gmra.mxu3 %vm499_vm4, %v2603_v45  ;;  %v485_v53 = vmul.f32 %v2794_v46, %v479_v50  ;;  %v486_v54 = vmul.f32 %v2796_v47, %v478_v49  ;;  %v2893_v45 = vperm.slane %v2378_v40, 1  ;;  %3685 = vst [vmem:[#allocation13_spill] sm:$0xff] %v2899_v51 }
  0x9e   : > { %3686 = vst [vmem:[#allocation14_spill] sm:$0xff] %v2901_v52 }
  0x9f   : > { %v487_v56 = vpack.c.bf16 %v485_v53, %v485_v53  ;;  %v488_v57 = vpack.c.bf16 %v486_v54, %v486_v54  ;;  %3684 = vst [vmem:[#allocation12_spill] sm:$0xff] %v2893_v45 }
  0xa1   : > { %v508_v60 = vsel %vm506_vm2, %v487_v56, 0  ;;  %v511_v61 = vsel %vm506_vm2, %v488_v57, 0  ;;  %v2613_v57 = vld [vmem:[%s3636_s1 + $0x50] sm:$0xff] }
  0xa2   : > { %520 = vmatpush.bf16.msra.mxu0 %v508_v60  ;;  %539 = vmatpush.bf16.msra.mxu1 %v511_v61 }
  0xa3   : > { %v708_v1 = vpop.permute.xlu1 %707  ;;  %v706_v2 = vpop.permute.xlu0 %705 }
  0xa4   : > { %v710_v3 = vsel %vm709_vm5, %v706_v2, %v708_v1  ;;  %v711_v4 = vsel %vm709_vm5, %v708_v1, %v706_v2  ;;  %v961_v41 = vpop.permute.xlu2 %960 }
  0xa5   : > { %2389 = vmatmul.msk.bf16.vlgmr.msra.gmra.mxu0 %vm499_vm4, %v2605_v62  ;;  %2391 = vmatmul.msk.bf16.vlgmr.msra.gmra.mxu1 %vm499_vm4, %v2605_v62  ;;  %v717_v5 = vmul.f32 %v2817_v63, %v711_v4  ;;  %v718_v6 = vmul.f32 %v2819_v0, %v710_v3 }
  0xa6   : > { %661 = vmatpush.bf16.msrb.mxu0 %v649_v58  ;;  %680 = vmatpush.bf16.msrb.mxu1 %v652_v59 }
  0xa7   : > { %v719_v7 = vpack.c.bf16 %v717_v5, %v717_v5  ;;  %v720_v8 = vpack.c.bf16 %v718_v6, %v718_v6  ;;  %v2611_v6 = vld [vmem:[%s3636_s1 + $0x40] sm:$0xff] }
  0xa9   : > { %v738_v12 = vsel %vm506_vm2, %v719_v7, 0  ;;  %v741_v13 = vsel %vm506_vm2, %v720_v8, 0  ;;  %v2614_v7 = vld [vmem:[%s3636_s1 + $0x58] sm:$0xff]  ;;  %v2612_v8 = vld [vmem:[%s3636_s1 + $0x48] sm:$0xff] }
  0xaa   : > { %750 = vmatpush.bf16.msrb.mxu2 %v738_v12  ;;  %769 = vmatpush.bf16.msrb.mxu3 %v741_v13 }
  0xab   : > { %825 = vmatpush.bf16.msra.mxu0 %v813_v26  ;;  %844 = vmatpush.bf16.msra.mxu1 %v816_v36  ;;  %v435_v36 = vld [vmem:[%s3637_s2] sm:$0xff] }
  0xad   : > { %2402 = vmatmul.msk.bf16.gmra.mxu2 %vm499_vm4, %v2604_v11  ;;  %2404 = vmatmul.msk.bf16.gmra.mxu3 %vm499_vm4, %v2604_v11  ;;  %v2380_v11 = vld [vmem:[%s3640_s5 + $0x10] sm:$0x3] }
  0xae   : > { %v2939_v12 = vperm.slane %v2380_v11, 0  ;;  %v2941_v13 = vperm.slane %v2380_v11, 1 }
  0xb0   : > { %3687 = vst [vmem:[#allocation15_spill] sm:$0xff] %v2939_v12 }
  0xb1   : > { %3688 = vst [vmem:[#allocation16_spill] sm:$0xff] %v2941_v13 }
  0xb3   : > { %v872_v15 = vpop.permute.xlu0 %871 }
  0xb4   : > { %v874_v22 = vsel %vm873_vm6, %v870_v17, %v872_v15  ;;  %v875_v25 = vsel %vm873_vm6, %v872_v15, %v870_v17 }
  0xb5   : > { %2390 = vmatmul.msk.bf16.gmra.mxu0 %vm499_vm4, %v2606_v14  ;;  %2392 = vmatmul.msk.bf16.gmra.mxu1 %vm499_vm4, %v2606_v14  ;;  %v881_v27 = vmul.f32 %v2847_v19, %v874_v22  ;;  %v882_v28 = vmul.f32 %v2849_v20, %v875_v25  ;;  %v1137_v14 = vpop.permute.xlu2 %1136 }
  0xb7   : > { %v883_v29 = vpack.c.bf16 %v881_v27, %v881_v27  ;;  %v884_v30 = vpack.c.bf16 %v882_v28, %v882_v28 }
  0xb9   : > { %v902_v33 = vsel %vm506_vm2, %v883_v29, 0  ;;  %v905_v34 = vsel %vm506_vm2, %v884_v30, 0  ;;  %v2615_v29 = vld [vmem:[%s3636_s1 + $0x60] sm:$0xff]  ;;  %v2618_v30 = vld [vmem:[%s3636_s1 + $0x78] sm:$0xff] }
  0xba   : > { %914 = vmatpush.bf16.msra.mxu2 %v902_v33  ;;  %933 = vmatpush.bf16.msra.mxu3 %v905_v34  ;;  %v2675_v33 = vmov 0   ;;  %v2616_v34 = vld [vmem:[%s3636_s1 + $0x68] sm:$0xff] }
  0xbb   : > { %v959_v39 = vpop.permute.xlu1 %958  ;;  %2658 = vset.pattern.permute.xlu0 %v2675_v33  ;;  %2656 = vset.pattern.permute.xlu1 %v2675_v33 }
  0xbc   : > { %v963_v48 = vsel %vm962_vm7, %v959_v39, %v961_v41  ;;  %v964_v49 = vsel %vm962_vm7, %v961_v41, %v959_v39  ;;  %2657 = vset.pattern.permute.xlu2 %v2675_v33  ;;  %1232 = vperm.xlu1 %2656, %v437_v35  }
  0xbd   : > { %2425 = vmatmul.msk.bf16.vlgmr.msrb.gmra.mxu2 %vm499_vm4, %v2609_v9  ;;  %2427 = vmatmul.msk.bf16.vlgmr.msrb.gmra.mxu3 %vm499_vm4, %v2609_v9  ;;  %v970_v55 = vmul.f32 %v2891_v44, %v963_v48  ;;  %v971_v56 = vmul.f32 %v2893_v45, %v964_v49 }
  0xbe   : > { %1222 = vperm.xlu0 %2658, %v435_v36  }
  0xbf   : > { %v972_v60 = vpack.c.bf16 %v970_v55, %v970_v55  ;;  %v973_v61 = vpack.c.bf16 %v971_v56, %v971_v56  ;;  %v2620_v56 = vld [vmem:[%s3636_s1 + $0x88] sm:$0xff] }
  0xc1   : > { %v991_v2 = vsel %vm506_vm2, %v972_v60, 0  ;;  %v994_v3 = vsel %vm506_vm2, %v973_v61, 0 }
  0xc3   : > { %v1050_v42 = vpop.permute.xlu1 %1049  ;;  %v1048_v50 = vpop.permute.xlu0 %1047 }
  0xc4   : > { %v1052_v53 = vsel %vm1051_vm8, %v1048_v50, %v1050_v42  ;;  %v1053_v54 = vsel %vm1051_vm8, %v1050_v42, %v1048_v50 }
  0xc5   : > { %2413 = vmatmul.msk.bf16.vlgmr.msrb.gmra.mxu0 %vm499_vm4, %v2607_v37  ;;  %2415 = vmatmul.msk.bf16.vlgmr.msrb.gmra.mxu1 %vm499_vm4, %v2607_v37  ;;  %v1059_v58 = vmul.f32 %v2899_v51, %v1052_v53  ;;  %v1060_v59 = vmul.f32 %v2901_v52, %v1053_v54  ;;  %v436_v37 = vld [vmem:[%s3637_s2 + $0x8] sm:$0xff] }
  0xc6   : > { %1003 = vmatpush.bf16.msrb.mxu0 %v991_v2  ;;  %1022 = vmatpush.bf16.msrb.mxu1 %v994_v3  ;;  %v438_v3 = vld [vmem:[%s3637_s2 + $0x18] sm:$0xff] }
  0xc7   : > { %v1061_v62 = vpack.c.bf16 %v1059_v58, %v1059_v58  ;;  %v1062_v1 = vpack.c.bf16 %v1060_v59, %v1060_v59  ;;  %1227 = vperm.xlu1 %2656, %v436_v37   ;;  %1237 = vperm.xlu2 %2657, %v438_v3  }
  0xc9   : > { %v1080_v4 = vsel %vm506_vm2, %v1061_v62, 0  ;;  %v1083_v5 = vsel %vm506_vm2, %v1062_v1, 0 }
  0xca   : > { %1092 = vmatpush.bf16.msrb.mxu2 %v1080_v4  ;;  %1111 = vmatpush.bf16.msrb.mxu3 %v1083_v5 }
  0xcb   : > { %v1139_v15 = vpop.permute.xlu0 %1138 }
  0xcc   : > { %v1141_v17 = vsel %vm1140_vm9, %v1137_v14, %v1139_v15  ;;  %v1142_v18 = vsel %vm1140_vm9, %v1139_v15, %v1137_v14 }
  0xcd   : > { %2426 = vmatmul.msk.bf16.gmra.mxu2 %vm499_vm4, %v2610_v38  ;;  %2428 = vmatmul.msk.bf16.gmra.mxu3 %vm499_vm4, %v2610_v38  ;;  %v1148_v22 = vmul.f32 %v2939_v12, %v1141_v17  ;;  %v1149_v25 = vmul.f32 %v2941_v13, %v1142_v18 }
  0xcf   : > { %v1150_v26 = vpack.c.bf16 %v1148_v22, %v1148_v22  ;;  %v1151_v27 = vpack.c.bf16 %v1149_v25, %v1149_v25 }
  0xd1   : > { %v1169_v28 = vsel %vm506_vm2, %v1150_v26, 0  ;;  %v1172_v9 = vsel %vm506_vm2, %v1151_v27, 0 }
  0xd5   : > { %2414 = vmatmul.msk.bf16.gmra.mxu0 %vm499_vm4, %v2608_v10  ;;  %2416 = vmatmul.msk.bf16.gmra.mxu1 %vm499_vm4, %v2608_v10  ;;  %v2619_v10 = vld [vmem:[%s3636_s1 + $0x80] sm:$0xff] }
  0xdd   : > { %2449 = vmatmul.msk.bf16.vlgmr.msra.gmra.mxu2 %vm499_vm4, %v2613_v57  ;;  %2451 = vmatmul.msk.bf16.vlgmr.msra.gmra.mxu3 %vm499_vm4, %v2613_v57 }
  0xe5   : > { %2437 = vmatmul.msk.bf16.vlgmr.msra.gmra.mxu0 %vm499_vm4, %v2611_v6  ;;  %2439 = vmatmul.msk.bf16.vlgmr.msra.gmra.mxu1 %vm499_vm4, %v2611_v6 }
  0xe6   : > { %1181 = vmatpush.bf16.msra.mxu0 %v1169_v28  ;;  %1200 = vmatpush.bf16.msra.mxu1 %v1172_v9 }
  0xed   : > { %2450 = vmatmul.msk.bf16.gmra.mxu2 %vm499_vm4, %v2614_v7  ;;  %2452 = vmatmul.msk.bf16.gmra.mxu3 %vm499_vm4, %v2614_v7 }
  0xf5   : > { %2438 = vmatmul.msk.bf16.gmra.mxu0 %vm499_vm4, %v2612_v8  ;;  %2440 = vmatmul.msk.bf16.gmra.mxu1 %vm499_vm4, %v2612_v8 }
  0xfd   : > { %2473 = vmatmul.msk.bf16.vlgmr.msrb.gmra.mxu2 %vm499_vm4, %v2617_v16  ;;  %2475 = vmatmul.msk.bf16.vlgmr.msrb.gmra.mxu3 %vm499_vm4, %v2617_v16 }
 0x105   : > { %2461 = vmatmul.msk.bf16.vlgmr.msrb.gmra.mxu0 %vm499_vm4, %v2615_v29  ;;  %2463 = vmatmul.msk.bf16.vlgmr.msrb.gmra.mxu1 %vm499_vm4, %v2615_v29 }
 0x10d   : > { %2474 = vmatmul.msk.bf16.gmra.mxu2 %vm499_vm4, %v2618_v30  ;;  %2476 = vmatmul.msk.bf16.gmra.mxu3 %vm499_vm4, %v2618_v30 }
 0x115   : > { %2462 = vmatmul.msk.bf16.gmra.mxu0 %vm499_vm4, %v2616_v34  ;;  %2464 = vmatmul.msk.bf16.gmra.mxu1 %vm499_vm4, %v2616_v34 }
 0x120   : > { %v582_v38 = vpop.f32.mrf.mxu2  ;;  %v601_v39 = vpop.f32.mrf.mxu3 }
 0x122   : > { %v522_v40 = vpop.f32.mrf.mxu0  ;;  %v541_v41 = vpop.f32.mrf.mxu1 }
 0x123   : > { %v583_v42 = vadd.f32 %v582_v38, %v522_v40  ;;  %v602_v43 = vadd.f32 %v601_v39, %v541_v41 }
 0x125   : > { %2485 = vmatmul.msk.bf16.vlgmr.msra.gmra.mxu0 %vm499_vm4, %v2619_v10  ;;  %2487 = vmatmul.msk.bf16.vlgmr.msra.gmra.mxu1 %vm499_vm4, %v2619_v10 }
 0x128   : > { %v2985_v48 = vpop.f32.mrf.mxu2  ;;  %v2987_v49 = vpop.f32.mrf.mxu3 }
 0x12a   : > { %v524_v50 = vpop.f32.mrf.mxu0  ;;  %v543_v53 = vpop.f32.mrf.mxu1 }
 0x12b   : > { %v585_v12 = vadd.f32 %v2985_v48, %v524_v50  ;;  %v604_v52 = vadd.f32 %v2987_v49, %v543_v53 }
 0x12e   : > { %v1233_v50 = vpop.permute.xlu1 %1232 }
 0x130   : > { %v587_v54 = vpop.f32.mrf.mxu2  ;;  %v606_v55 = vpop.f32.mrf.mxu3 }
 0x132   : > { %v527_v57 = vpop.f32.mrf.mxu0  ;;  %v546_v58 = vpop.f32.mrf.mxu1 }
 0x133   : > { %v588_v59 = vadd.f32 %v587_v54, %v527_v57  ;;  %v607_v60 = vadd.f32 %v606_v55, %v546_v58 }
 0x135   : > { %2486 = vmatmul.msk.bf16.gmra.mxu0 %vm499_vm4, %v2620_v56  ;;  %2488 = vmatmul.msk.bf16.gmra.mxu1 %vm499_vm4, %v2620_v56 }
 0x138   : > { %v2998_v1 = vpop.f32.mrf.mxu2  ;;  %v3000_v2 = vpop.f32.mrf.mxu3 }
 0x13a   : > { %v2994_v61 = vpop.f32.mrf.mxu0  ;;  %v2996_v62 = vpop.f32.mrf.mxu1 }
 0x140   : > { %v752_v8 = vpop.f32.mrf.mxu2  ;;  %v771_v11 = vpop.f32.mrf.mxu3 }
 0x142   : > { %v663_v4 = vpop.f32.mrf.mxu0  ;;  %v682_v5 = vpop.f32.mrf.mxu1 }
 0x143   : > { %v692_v6 = vadd.f32 %v663_v4, %v583_v42  ;;  %v693_v7 = vadd.f32 %v682_v5, %v602_v43 }
 0x145   : > { %v782_v13 = vadd.f32 %v771_v11, %v693_v7  ;;  %v1223_v11 = vpop.permute.xlu0 %1222 }
 0x148   : > { %v754_v16 = vpop.f32.mrf.mxu2  ;;  %v773_v22 = vpop.f32.mrf.mxu3 }
 0x14a   : > { %v665_v14 = vpop.f32.mrf.mxu0  ;;  %v684_v15 = vpop.f32.mrf.mxu1 }
 0x14b   : > { %v694_v45 = vadd.f32 %v665_v14, %v585_v12  ;;  %v695_v44 = vadd.f32 %v684_v15, %v604_v52 }
 0x14d   : > { %v783_v31 = vadd.f32 %v754_v16, %v694_v45  ;;  %v784_v47 = vadd.f32 %v773_v22, %v695_v44 }
 0x150   : > { %v757_v9 = vpop.f32.mrf.mxu2  ;;  %v776_v29 = vpop.f32.mrf.mxu3 }
 0x152   : > { %v668_v17 = vpop.f32.mrf.mxu0  ;;  %v687_v18 = vpop.f32.mrf.mxu1 }
 0x153   : > { %v696_v25 = vadd.f32 %v668_v17, %v588_v59  ;;  %v697_v26 = vadd.f32 %v687_v18, %v607_v60  ;;  %v781_v18 = vadd.f32 %v752_v8, %v692_v6 }
 0x158   : > { %v3009_v34 = vpop.f32.mrf.mxu2  ;;  %v3011_v35 = vpop.f32.mrf.mxu3 }
 0x15a   : > { %v3005_v27 = vpop.f32.mrf.mxu0  ;;  %v3007_v28 = vpop.f32.mrf.mxu1 }
 0x160   : > { %v916_v38 = vpop.f32.mrf.mxu2  ;;  %v935_v39 = vpop.f32.mrf.mxu3 }
 0x162   : > { %v846_v30 = vpop.f32.mrf.mxu1  ;;  %v827_v33 = vpop.f32.mrf.mxu0 }
 0x163   : > { %v857_v51 = vadd.f32 %v846_v30, %v782_v13  ;;  %v856_v20 = vadd.f32 %v827_v33, %v781_v18  ;;  %v785_v18 = vadd.f32 %v757_v9, %v696_v25  ;;  %v1228_v25 = vpop.permute.xlu1 %1227 }
 0x165   : > { %v945_v23 = vadd.f32 %v916_v38, %v856_v20  ;;  %v946_v32 = vadd.f32 %v935_v39, %v857_v51  ;;  %v786_v20 = vadd.f32 %v776_v29, %v697_v26 }
 0x168   : > { %v918_v41 = vpop.f32.mrf.mxu2  ;;  %v937_v54 = vpop.f32.mrf.mxu3 }
 0x16a   : > { %v829_v36 = vpop.f32.mrf.mxu0  ;;  %v848_v37 = vpop.f32.mrf.mxu1 }
 0x16b   : > { %v858_v8 = vadd.f32 %v829_v36, %v783_v31  ;;  %v859_v48 = vadd.f32 %v848_v37, %v784_v47  ;;  %v590_v31 = vadd.f32 %v2998_v1, %v2994_v61  ;;  %v609_v61 = vadd.f32 %v3000_v2, %v2996_v62 }
 0x16d   : > { %v947_v14 = vadd.f32 %v918_v41, %v858_v8  ;;  %v948_v15 = vadd.f32 %v937_v54, %v859_v48  ;;  %v698_v22 = vadd.f32 %v3005_v27, %v590_v31  ;;  %v699_v27 = vadd.f32 %v3007_v28, %v609_v61 }
 0x16f   : > { %v788_v2 = vadd.f32 %v3011_v35, %v699_v27 }
 0x170   : > { %v921_v57 = vpop.f32.mrf.mxu2  ;;  %v940_v58 = vpop.f32.mrf.mxu3 }
 0x172   : > { %v832_v10 = vpop.f32.mrf.mxu0  ;;  %v851_v40 = vpop.f32.mrf.mxu1 }
 0x173   : > { %v860_v47 = vadd.f32 %v832_v10, %v785_v18  ;;  %v787_v10 = vadd.f32 %v3009_v34, %v698_v22 }
 0x175   : > { %v949_v9 = vadd.f32 %v921_v57, %v860_v47 }
 0x178   : > { %v3017_v3 = vpop.f32.mrf.mxu2  ;;  %v3019_v4 = vpop.f32.mrf.mxu3 }
 0x17a   : > { %v3013_v42 = vpop.f32.mrf.mxu0  ;;  %v3015_v43 = vpop.f32.mrf.mxu1 }
 0x180   : > { %v1094_v19 = vpop.f32.mrf.mxu2  ;;  %v1113_v0 = vpop.f32.mrf.mxu3 }
 0x182   : > { %v1005_v55 = vpop.f32.mrf.mxu0  ;;  %v1024_v56 = vpop.f32.mrf.mxu1 }
 0x183   : > { %v1034_v6 = vadd.f32 %v1005_v55, %v945_v23  ;;  %v1035_v7 = vadd.f32 %v1024_v56, %v946_v32 }
 0x185   : > { %v1123_v49 = vadd.f32 %v1094_v19, %v1034_v6  ;;  %v1124_v13 = vadd.f32 %v1113_v0, %v1035_v7  ;;  %v861_v0 = vadd.f32 %v851_v40, %v786_v20 }
 0x187   : > { %v950_v29 = vadd.f32 %v940_v58, %v861_v0 }
 0x188   : > { %v1096_v53 = vpop.f32.mrf.mxu2  ;;  %v1115_v51 = vpop.f32.mrf.mxu3 }
 0x18a   : > { %v1007_v59 = vpop.f32.mrf.mxu0  ;;  %v1026_v60 = vpop.f32.mrf.mxu1 }
 0x18b   : > { %v1036_v45 = vadd.f32 %v1007_v59, %v947_v14  ;;  %v1037_v44 = vadd.f32 %v1026_v60, %v948_v15  ;;  %v862_v60 = vadd.f32 %v3013_v42, %v787_v10  ;;  %v3689_v10 = vld [vmem:[#allocation6_spill] sm:$0xff] }
 0x18d   : > { %v1125_v36 = vadd.f32 %v1096_v53, %v1036_v45  ;;  %v1126_v37 = vadd.f32 %v1115_v51, %v1037_v44  ;;  %v951_v42 = vadd.f32 %v3017_v3, %v862_v60 }
 0x190   : > { %v1099_v40 = vpop.f32.mrf.mxu2  ;;  %v1118_v59 = vpop.f32.mrf.mxu3 }
 0x192   : > { %v1010_v5 = vpop.f32.mrf.mxu0  ;;  %v1029_v17 = vpop.f32.mrf.mxu1 }
 0x193   : > { %v1038_v41 = vadd.f32 %v1010_v5, %v949_v9  ;;  %v1039_v54 = vadd.f32 %v1029_v17, %v950_v29  ;;  %v863_v5 = vadd.f32 %v3015_v43, %v788_v2  ;;  %v1238_v43 = vpop.permute.xlu2 %1237 }
 0x195   : > { %v1127_v57 = vadd.f32 %v1099_v40, %v1038_v41  ;;  %v1128_v58 = vadd.f32 %v1118_v59, %v1039_v54 }
 0x198   : > { %v1120_v14 = vpop.f32.mrf.mxu3 }
 0x19a   : > { %v3023_v63 = vpop.f32.mrf.mxu0  ;;  %v3025_v24 = vpop.f32.mrf.mxu1 }
 0x19b   : > { %v1040_v8 = vadd.f32 %v3023_v63, %v951_v42 }
 0x1a2   : > { %v1183_v12 = vpop.f32.mrf.mxu0  ;;  %v1202_v52 = vpop.f32.mrf.mxu1 }
 0x1a3   : > { %v1212_v30 = vadd.f32 %v1183_v12, %v1123_v49  ;;  %v1213_v33 = vadd.f32 %v1202_v52, %v1124_v13  ;;  %v1101_v49 = vpop.f32.mrf.mxu2  ;;  %v952_v13 = vadd.f32 %v3019_v4, %v863_v5 }
 0x1a4   : > { %v1129_v52 = vadd.f32 %v1101_v49, %v1040_v8 }
 0x1a5   : > { %v1240_v23 = vadd.f32 %v1223_v11, %v1212_v30  ;;  %v1241_v32 = vadd.f32 %v1223_v11, %v1213_v33  ;;  %v1041_v12 = vadd.f32 %v3025_v24, %v952_v13 }
 0x1a7   : > { %v3029_v19 = vmax.f32 %v1240_v23, 0.0  ;;  %v3031_v16 = vmax.f32 %v1241_v32, 0.0 }
 0x1a9   : > { %1300 = vrot.lane.b32.xlu0 %v3031_v16, %s2668_s12  ;;  %1292 = vrot.lane.b32.xlu1 %v3029_v19, %s2668_s12 }
 0x1aa   : > { %v1185_v1 = vpop.f32.mrf.mxu0  ;;  %v1204_v26 = vpop.f32.mrf.mxu1 }
 0x1ab   : > { %v1214_v38 = vadd.f32 %v1185_v1, %v1125_v36  ;;  %v1215_v39 = vadd.f32 %v1204_v26, %v1126_v37 }
 0x1ad   : > { %v1242_v55 = vadd.f32 %v1228_v25, %v1214_v38  ;;  %v1243_v56 = vadd.f32 %v1228_v25, %v1215_v39 }
 0x1af   : > { %v3043_v6 = vmax.f32 %v1242_v55, 0.0  ;;  %v3045_v62 = vmax.f32 %v1243_v56, 0.0 }
 0x1b1   : > { %1302 = vrot.lane.b32.xlu1 %v3045_v62, %s2668_s12  ;;  %1294 = vrot.lane.b32.xlu2 %v3043_v6, %s2668_s12 }
 0x1b2   : > { %v1188_v28 = vpop.f32.mrf.mxu0  ;;  %v1207_v34 = vpop.f32.mrf.mxu1 }
 0x1b3   : > { %v1216_v17 = vadd.f32 %v1188_v28, %v1127_v57  ;;  %v1217_v7 = vadd.f32 %v1207_v34, %v1128_v58 }
 0x1b5   : > { %v1244_v48 = vadd.f32 %v1233_v50, %v1216_v17  ;;  %v1245_v35 = vadd.f32 %v1233_v50, %v1217_v7  ;;  %v1130_v50 = vadd.f32 %v1120_v14, %v1041_v12  ;;  %v439_v12 = vld [vmem:[%s3639_s4] sm:$0xff] }
 0x1b7   : > { %v3056_v53 = vmax.f32 %v1244_v48, 0.0  ;;  %v3058_v11 = vmax.f32 %v1245_v35, 0.0  ;;  %v2623_v35 = vld [vmem:[%s3638_s3 + $0x10] sm:$0xff] }
 0x1b9   : > { %1449 = vrot.lane.b32.xlu1 %v3058_v11, %s2669_s13  ;;  %1260 = vrot.lane.b32.xlu0 %v3056_v53, %s2667_s11 }
 0x1ba   : > { %1296 = vrot.lane.b32.xlu2 %v3056_v53, %s2668_s12  ;;  %v1190_v63 = vpop.f32.mrf.mxu0  ;;  %v1209_v4 = vpop.f32.mrf.mxu1 }
 0x1bb   : > { %v1218_v3 = vadd.f32 %v1190_v63, %v1129_v52  ;;  %v1219_v30 = vadd.f32 %v1209_v4, %v1130_v50 }
 0x1bd   : > { %v1246_v15 = vadd.f32 %v1238_v43, %v1218_v3  ;;  %v1247_v24 = vadd.f32 %v1238_v43, %v1219_v30 }
 0x1bf   : > { %v3067_v33 = vmax.f32 %v1246_v15, 0.0  ;;  %v3075_v18 = vmax.f32 %v1247_v24, 0.0  ;;  %v3690_v15 = vld [vmem:[#allocation4_spill] sm:$0xff] }
 0x1c1   : > { %1445 = vrot.lane.b32.xlu0 %v3031_v16, %s2669_s13  ;;  %1298 = vrot.lane.b32.xlu1 %v3067_v33, %s2668_s12 }
 0x1c2   : > { %1304 = vrot.lane.b32.xlu2 %v3058_v11, %s2668_s12 }
 0x1c9   : > { %1306 = vrot.lane.b32.xlu0 %v3075_v18, %s2668_s12  ;;  %1437 = vrot.lane.b32.xlu1 %v3029_v19, %s2669_s13 }
 0x1ca   : > { %1441 = vrot.lane.b32.xlu2 %v3056_v53, %s2669_s13 }
 0x1d1   : > { %1258 = vrot.lane.b32.xlu0 %v3043_v6, %s2667_s11  ;;  %1447 = vrot.lane.b32.xlu1 %v3045_v62, %s2669_s13 }
 0x1d2   : > { %1268 = vrot.lane.b32.xlu2 %v3058_v11, %s2667_s11 }
 0x1d9   : > { %1539 = vrot.lane.b32.xlu0 %v3056_v53, %s2670_s14  ;;  %1264 = vrot.lane.b32.xlu1 %v3031_v16, %s2667_s11 }
 0x1da   : > { %1439 = vrot.lane.b32.xlu2 %v3043_v6, %s2669_s13 }
 0x1e1   : > { %1443 = vrot.lane.b32.xlu0 %v3067_v33, %s2669_s13  ;;  %1262 = vrot.lane.b32.xlu1 %v3067_v33, %s2667_s11 }
 0x1e2   : > { %1256 = vrot.lane.b32.xlu2 %v3029_v19, %s2667_s11 }
 0x1e9   : > { %1270 = vrot.lane.b32.xlu0 %v3075_v18, %s2667_s11  ;;  %1535 = vrot.lane.b32.xlu1 %v3029_v19, %s2670_s14 }
 0x1ea   : > { %1266 = vrot.lane.b32.xlu2 %v3045_v62, %s2667_s11 }
 0x1f1   : > { %1543 = vrot.lane.b32.xlu0 %v3031_v16, %s2670_s14  ;;  %1545 = vrot.lane.b32.xlu1 %v3045_v62, %s2670_s14 }
 0x1f2   : > { %1451 = vrot.lane.b32.xlu2 %v3075_v18, %s2669_s13 }
 0x1f9   : > { %1703 = vrot.lane.b32.xlu0 %v3056_v53, %s2671_s15  ;;  %1809 = vrot.lane.b32.xlu1 %v3058_v11, %s2672_s16 }
 0x1fa   : > { %1547 = vrot.lane.b32.xlu2 %v3058_v11, %s2670_s14 }
 0x201   : > { %1805 = vrot.lane.b32.xlu0 %v3031_v16, %s2672_s16  ;;  %1541 = vrot.lane.b32.xlu1 %v3067_v33, %s2670_s14 }
 0x202   : > { %1537 = vrot.lane.b32.xlu2 %v3043_v6, %s2670_s14 }
 0x209   : > { %1549 = vrot.lane.b32.xlu0 %v3075_v18, %s2670_s14  ;;  %1797 = vrot.lane.b32.xlu1 %v3029_v19, %s2672_s16 }
 0x20a   : > { %1801 = vrot.lane.b32.xlu2 %v3056_v53, %s2672_s16 }
 0x20b   : > { %v1295_v20 = vpop.permute.xlu2 %1294 }
 0x211   : > { %1701 = vrot.lane.b32.xlu0 %v3043_v6, %s2671_s15  ;;  %1807 = vrot.lane.b32.xlu1 %v3045_v62, %s2672_s16 }
 0x212   : > { %1711 = vrot.lane.b32.xlu2 %v3058_v11, %s2671_s15 }
 0x214   : > { %v1297_v51 = vpop.permute.xlu2 %1296 }
 0x219   : > { %1997 = vrot.lane.b32.xlu0 %v3056_v53, %s2674_s18  ;;  %1707 = vrot.lane.b32.xlu1 %v3031_v16, %s2671_s15 }
 0x21a   : > { %1799 = vrot.lane.b32.xlu2 %v3043_v6, %s2672_s16 }
 0x21b   : > { %v1293_v45 = vpop.permute.xlu1 %1292  ;;  %v1301_v23 = vpop.permute.xlu0 %1300 }
 0x21c   : > { %v1305_v44 = vpop.permute.xlu2 %1304  ;;  %v1312_v59 = vsel %vm477_vm3, %v1301_v23, %v1293_v45  ;;  %v1308_v57 = vsel %vm477_vm3, %v1293_v45, %v1301_v23 }
 0x21d   : > { %v1314_v61 = vsel %vm477_vm3, %v1305_v44, %v1297_v51  ;;  %v1310_v1 = vsel %vm477_vm3, %v1297_v51, %v1305_v44  ;;  %v1316_v34 = vmul.f32 %v1312_v59, %v2794_v46  ;;  %v1317_v5 = vmul.f32 %v1308_v57, %v3689_v10  ;;  %v3691_v51 = vld [vmem:[#allocation5_spill] sm:$0xff]  ;;  %v2624_v44 = vld [vmem:[%s3638_s3 + $0x18] sm:$0xff] }
 0x21e   : > { %v1320_v29 = vmul.f32 %v1314_v61, %v2794_v46  ;;  %v1321_v40 = vmul.f32 %v1310_v1, %v3689_v10 }
 0x221   : > { %1803 = vrot.lane.b32.xlu0 %v3067_v33, %s2672_s16  ;;  %1705 = vrot.lane.b32.xlu1 %v3067_v33, %s2671_s15 }
 0x222   : > { %1699 = vrot.lane.b32.xlu2 %v3029_v19, %s2671_s15 }
 0x223   : > { %v1303_v32 = vpop.permute.xlu1 %1302 }
 0x224   : > { %v3149_v31 = vpop.permute.xlu2 %1441  ;;  %v1313_v41 = vsel %vm477_vm3, %v1303_v32, %v1295_v20  ;;  %v1309_v56 = vsel %vm477_vm3, %v1295_v20, %v1303_v32  ;;  %v441_v32 = vld [vmem:[%s3639_s4 + $0x10] sm:$0xff] }
 0x225   : > { %v1318_v58 = vmul.f32 %v1313_v41, %v2794_v46  ;;  %v1319_v28 = vmul.f32 %v1309_v56, %v3689_v10 }
 0x227   : > { %v1324_v8 = vpack.c.bf16 %v1318_v58, %v1316_v34  ;;  %v1325_v48 = vpack.c.bf16 %v1319_v28, %v1317_v5  ;;  %v1635_v5 = vpack.c.bf16 %v3067_v33, %v3056_v53 }
 0x229   : > { %1713 = vrot.lane.b32.xlu0 %v3075_v18, %s2671_s15  ;;  %1899 = vrot.lane.b32.xlu1 %v3056_v53, %s2673_s17  ;;  %v440_v53 = vld [vmem:[%s3639_s4 + $0x8] sm:$0xff] }
 0x22a   : > { %1709 = vrot.lane.b32.xlu2 %v3045_v62, %s2671_s15  ;;  %s2600_s15 = sshll.u32 %s3705_s28, 6 }
 0x22b   : > { %v1450_v47 = vpop.permute.xlu1 %1449  ;;  %v3157_v0 = vpop.permute.xlu0 %1260  ;;  %s3595_s19 = scalar_lea.vmem %s3641_s6, %s2600_s15 }
 0x22c   : > { %v3159_v22 = vpop.permute.xlu2 %1268  ;;  %v1459_v52 = vsel %vm620_vm1, %v1450_v47, %v3149_v31  ;;  %v1455_v14 = vsel %vm620_vm1, %v3149_v31, %v1450_v47 }
 0x22d   : > { %v1465_v30 = vmul.f32 %v1459_v52, %v3690_v15  ;;  %v1466_v23 = vmul.f32 %v1455_v14, %v3691_v51  ;;  %v1274_v61 = vsel %vm456_vm0, %v3157_v0, %v3159_v22  ;;  %v1278_v1 = vsel %vm456_vm0, %v3159_v22, %v3157_v0  ;;  %v3692_v0 = vld [vmem:[#allocation2_spill] sm:$0xff] }
 0x22e   : > { %v1284_v22 = vmul.f32 %v1278_v1, %v3692_v0 }
 0x231   : > { %1907 = vrot.lane.b32.xlu0 %v3058_v11, %s2673_s17  ;;  %2001 = vrot.lane.b32.xlu1 %v3031_v16, %s2674_s18 }
 0x232   : > { %1811 = vrot.lane.b32.xlu2 %v3075_v18, %s2672_s16 }
 0x233   : > { %v3167_v36 = vpop.permute.xlu0 %1445  ;;  %v1299_v37 = vpop.permute.xlu1 %1298 }
 0x234   : > { %v3169_v25 = vpop.permute.xlu2 %1439 }
 0x239   : > { %1995 = vrot.lane.b32.xlu0 %v3043_v6, %s2674_s18  ;;  %1999 = vrot.lane.b32.xlu1 %v3067_v33, %s2674_s18 }
 0x23a   : > { %2005 = vrot.lane.b32.xlu2 %v3058_v11, %s2674_s18 }
 0x23b   : > { %v1307_v26 = vpop.permute.xlu0 %1306  ;;  %v3181_v9 = vpop.permute.xlu1 %1437 }
 0x23c   : > { %v1311_v38 = vsel %vm477_vm3, %v1299_v37, %v1307_v26  ;;  %v1315_v39 = vsel %vm477_vm3, %v1307_v26, %v1299_v37  ;;  %v3188_v27 = vpop.permute.xlu2 %1256  ;;  %v1457_v31 = vsel %vm620_vm1, %v3167_v36, %v3181_v9 }
 0x23d   : > { %v1322_v54 = vmul.f32 %v1315_v39, %v2794_v46  ;;  %v1323_v55 = vmul.f32 %v1311_v38, %v3689_v10  ;;  %v442_v38 = vld [vmem:[%s3639_s4 + $0x18] sm:$0xff]  ;;  %v1461_v39 = vmul.f32 %v1457_v31, %v3690_v15 }
 0x23f   : > { %v1326_v60 = vpack.c.bf16 %v1322_v54, %v1320_v29  ;;  %v1327_v2 = vpack.c.bf16 %v1323_v55, %v1321_v40  ;;  %v3693_v40 = vld [vmem:[#allocation3_spill] sm:$0xff] }
 0x240   : > { %v1285_v41 = vmul.f32 %v1274_v61, %v3693_v40 }
 0x241   : > { %1895 = vrot.lane.b32.xlu0 %v3029_v19, %s2673_s17  ;;  %1909 = vrot.lane.b32.xlu1 %v3075_v18, %s2673_s17 }
 0x242   : > { %1993 = vrot.lane.b32.xlu2 %v3029_v19, %s2674_s18  ;;  %1351 = vmatpush.bf16.msra.mxu2 %v1326_v60 }
 0x243   : > { %1370 = vmatpush.bf16.msra.mxu3 %v1327_v2  ;;  %v3211_v42 = vpop.permute.xlu0 %1258  ;;  %v1448_v17 = vpop.permute.xlu1 %1447 }
 0x244   : > { %v3213_v7 = vpop.permute.xlu2 %1266  ;;  %v1458_v24 = vsel %vm620_vm1, %v1448_v17, %v3169_v25  ;;  %v1454_v47 = vsel %vm620_vm1, %v3169_v25, %v1448_v17  ;;  %v1453_v25 = vsel %vm620_vm1, %v3181_v9, %v3167_v36  ;;  %v1636_v17 = vpack.c.bf16 %v3075_v18, %v3058_v11 }
 0x245   : > { %v1463_v26 = vmul.f32 %v1458_v24, %v3690_v15  ;;  %v1464_v10 = vmul.f32 %v1454_v47, %v3691_v51  ;;  %v1462_v9 = vmul.f32 %v1453_v25, %v3691_v51  ;;  %v2626_v24 = vld [vmem:[%s3638_s3 + $0x28] sm:$0xff] }
 0x246   : > { %1352 = vmatpush.bf16.msra.mxu2 %v1324_v8  ;;  %v1273_v8 = vsel %vm456_vm0, %v3211_v42, %v3213_v7 }
 0x247   : > { %1371 = vmatpush.bf16.msra.mxu3 %v1325_v48  ;;  %v1469_v60 = vpack.c.bf16 %v1463_v26, %v1461_v39  ;;  %v1470_v34 = vpack.c.bf16 %v1464_v10, %v1462_v9 }
 0x249   : > { %2497 = vmatmul.msk.bf16.vlgmr.msra.gmra.mxu2 %vm1338_vm10, %v2623_v35  ;;  %2007 = vrot.lane.b32.xlu0 %v3075_v18, %s2674_s18 }
 0x24a   : > { %2499 = vmatmul.msk.bf16.vlgmr.msra.gmra.mxu3 %vm1338_vm10, %v2623_v35  ;;  %2003 = vrot.lane.b32.xlu2 %v3045_v62, %s2674_s18 }
 0x24b   : > { %1897 = vrot.lane.b32.xlu1 %v3043_v6, %s2673_s17  ;;  %v3226_v46 = vpop.permute.xlu0 %1539  ;;  %v1265_v49 = vpop.permute.xlu1 %1264 }
 0x24c   : > { %v1452_v13 = vpop.permute.xlu2 %1451  ;;  %v1272_v2 = vsel %vm456_vm0, %v3188_v27, %v1265_v49  ;;  %v1276_v57 = vsel %vm456_vm0, %v1265_v49, %v3188_v27  ;;  %v1277_v27 = vsel %vm456_vm0, %v3213_v7, %v3211_v42  ;;  %v1283_v49 = vmul.f32 %v1273_v8, %v3693_v40  ;;  %v3696_v8 = vld [vmem:[#allocation11_spill] sm:$0xff] }
 0x24d   : > { %v1281_v11 = vmul.f32 %v1272_v2, %v3693_v40  ;;  %v1282_v18 = vmul.f32 %v1277_v27, %v3692_v0  ;;  %v1633_v42 = vpack.c.bf16 %v3043_v6, %v3029_v19  ;;  %v1634_v7 = vpack.c.bf16 %v3045_v62, %v3031_v16  ;;  %v2625_v19 = vld [vmem:[%s3638_s3 + $0x20] sm:$0xff] }
 0x251   : > { %1905 = vrot.lane.b32.xlu0 %v3045_v62, %s2673_s17 }
 0x252   : > { %1901 = vrot.lane.b32.xlu2 %v3067_v33, %s2673_s17  ;;  %v1280_v33 = vmul.f32 %v1276_v57, %v3692_v0 }
 0x253   : > { %2093 = vperm.xlu1 %2656, %v439_v12   ;;  %v1444_v63 = vpop.permute.xlu0 %1443  ;;  %v1263_v43 = vpop.permute.xlu1 %1262 }
 0x254   : > { %v3241_v3 = vpop.permute.xlu2 %1547  ;;  %v1456_v4 = vsel %vm620_vm1, %v1444_v63, %v1452_v13  ;;  %v1460_v50 = vsel %vm620_vm1, %v1452_v13, %v1444_v63  ;;  %v1288_v14 = vpack.c.bf16 %v1282_v18, %v1280_v33  ;;  %v1289_v63 = vpack.c.bf16 %v1283_v49, %v1281_v11  ;;  %v3697_v33 = vld [vmem:[#allocation12_spill] sm:$0xff] }
 0x255   : > { %v1467_v20 = vmul.f32 %v1460_v50, %v3690_v15  ;;  %v1468_v45 = vmul.f32 %v1456_v4, %v3691_v51  ;;  %v1557_v51 = vsel %vm709_vm5, %v3241_v3, %v3226_v46 }
 0x257   : > { %v1471_v37 = vpack.c.bf16 %v1467_v20, %v1465_v30  ;;  %v1472_v29 = vpack.c.bf16 %v1468_v45, %v1466_v23  ;;  %v2622_v30 = vld [vmem:[%s3638_s3 + $0x8] sm:$0xff]  ;;  %v1553_v20 = vsel %vm709_vm5, %v3226_v46, %v3241_v3  ;;  %v3694_v45 = vld [vmem:[#allocation7_spill] sm:$0xff]  ;;  %v3695_v23 = vld [vmem:[#allocation8_spill] sm:$0xff] }
 0x259   : > { %2498 = vmatmul.msk.bf16.gmra.mxu2 %vm1338_vm10, %v2624_v44  ;;  %2103 = vperm.xlu0 %2658, %v441_v32   ;;  %v1564_v32 = vmul.f32 %v1553_v20, %v3695_v23 }
 0x25a   : > { %2500 = vmatmul.msk.bf16.gmra.mxu3 %vm1338_vm10, %v2624_v44  ;;  %1903 = vrot.lane.b32.xlu2 %v3031_v16, %s2673_s17  ;;  %v1563_v44 = vmul.f32 %v1557_v51, %v3694_v45 }
 0x25b   : > { %2108 = vperm.xlu1 %2656, %v442_v38   ;;  %1495 = vmatpush.bf16.msrb.mxu2 %v1471_v37  ;;  %v1271_v54 = vpop.permute.xlu0 %1270  ;;  %v3291_v36 = vpop.permute.xlu1 %1535 }
 0x25c   : > { %1514 = vmatpush.bf16.msrb.mxu3 %v1472_v29  ;;  %v3294_v55 = vpop.permute.xlu2 %1537  ;;  %v1275_v56 = vsel %vm456_vm0, %v1263_v43, %v1271_v54  ;;  %v1279_v59 = vsel %vm456_vm0, %v1271_v54, %v1263_v43  ;;  %v2621_v43 = vld [vmem:[%s3638_s3] sm:$0xff] }
 0x25d   : > { %v1286_v58 = vmul.f32 %v1279_v59, %v3692_v0  ;;  %v1287_v28 = vmul.f32 %v1275_v56, %v3693_v40  ;;  %v2627_v59 = vld [vmem:[%s3638_s3 + $0x30] sm:$0xff] }
 0x25f   : > { %v1290_v48 = vpack.c.bf16 %v1286_v58, %v1284_v22  ;;  %v1291_v35 = vpack.c.bf16 %v1287_v28, %v1285_v41  ;;  %1496 = vmatpush.bf16.msrb.mxu2 %v1469_v60  ;;  %v2629_v60 = vld [vmem:[%s3638_s3 + $0x40] sm:$0xff] }
 0x260   : > { %1515 = vmatpush.bf16.msrb.mxu3 %v1470_v34 }
 0x261   : > { %1405 = vmatpush.bf16.msrb.mxu0 %v1290_v48  ;;  %1424 = vmatpush.bf16.msrb.mxu1 %v1291_v35 }
 0x262   : > { %2098 = vperm.xlu2 %2657, %v440_v53  }
 0x263   : > { %1659 = vmatpush.bf16.msra.mxu2 %v1635_v5  ;;  %v1544_v13 = vpop.permute.xlu0 %1543  ;;  %v1546_v12 = vpop.permute.xlu1 %1545 }
 0x264   : > { %1678 = vmatpush.bf16.msra.mxu3 %v1636_v17  ;;  %v3331_v52 = vpop.permute.xlu2 %1801  ;;  %v1555_v37 = vsel %vm709_vm5, %v1544_v13, %v3291_v36  ;;  %v1556_v46 = vsel %vm709_vm5, %v1546_v12, %v3294_v55  ;;  %v1551_v26 = vsel %vm709_vm5, %v3291_v36, %v1544_v13  ;;  %v1552_v29 = vsel %vm709_vm5, %v3294_v55, %v1546_v12  ;;  %v2630_v12 = vld [vmem:[%s3638_s3 + $0x48] sm:$0xff] }
 0x265   : > { %1406 = vmatpush.bf16.msrb.mxu0 %v1288_v14  ;;  %1425 = vmatpush.bf16.msrb.mxu1 %v1289_v63  ;;  %v1559_v39 = vmul.f32 %v1555_v37, %v3694_v45  ;;  %v1561_v10 = vmul.f32 %v1556_v46, %v3694_v45  ;;  %v1560_v40 = vmul.f32 %v1551_v26, %v3695_v23 }
 0x266   : > { %v1562_v41 = vmul.f32 %v1552_v29, %v3695_v23 }
 0x267   : > { %1660 = vmatpush.bf16.msra.mxu2 %v1633_v42  ;;  %v1567_v9 = vpack.c.bf16 %v1561_v10, %v1559_v39 }
 0x268   : > { %1679 = vmatpush.bf16.msra.mxu3 %v1634_v7  ;;  %2509 = vmatmul.msk.bf16.vlgmr.msrb.gmra.mxu0 %vm1338_vm10, %v2621_v43  ;;  %v1568_v56 = vpack.c.bf16 %v1562_v41, %v1560_v40  ;;  %v2628_v7 = vld [vmem:[%s3638_s3 + $0x38] sm:$0xff] }
 0x269   : > { %2511 = vmatmul.msk.bf16.vlgmr.msrb.gmra.mxu1 %vm1338_vm10, %v2621_v43  ;;  %2521 = vmatmul.msk.bf16.vlgmr.msrb.gmra.mxu2 %vm1338_vm10, %v2625_v19 }
 0x26a   : > { %2523 = vmatmul.msk.bf16.vlgmr.msrb.gmra.mxu3 %vm1338_vm10, %v2625_v19 }
 0x26b   : > { %v3343_v16 = vpop.permute.xlu0 %1703  ;;  %v1810_v6 = vpop.permute.xlu1 %1809 }
 0x26c   : > { %v3345_v62 = vpop.permute.xlu2 %1711  ;;  %v1815_v28 = vsel %vm962_vm7, %v3331_v52, %v1810_v6  ;;  %v1819_v34 = vsel %vm962_vm7, %v1810_v6, %v3331_v52 }
 0x26d   : > { %v1825_v27 = vmul.f32 %v1815_v28, %v3696_v8  ;;  %v1826_v11 = vmul.f32 %v1819_v34, %v3697_v33  ;;  %v1717_v43 = vsel %vm873_vm6, %v3343_v16, %v3345_v62  ;;  %v1721_v19 = vsel %vm873_vm6, %v3345_v62, %v3343_v16  ;;  %v3699_v62 = vld [vmem:[#allocation10_spill] sm:$0xff] }
 0x26e   : > { %v1728_v20 = vmul.f32 %v1721_v19, %v3699_v62 }
 0x273   : > { %v3347_v4 = vpop.permute.xlu0 %1805  ;;  %v1542_v50 = vpop.permute.xlu1 %1541 }
 0x274   : > { %v1800_v15 = vpop.permute.xlu2 %1799 }
 0x278   : > { %2510 = vmatmul.msk.bf16.gmra.mxu0 %vm1338_vm10, %v2622_v30 }
 0x279   : > { %2512 = vmatmul.msk.bf16.gmra.mxu1 %vm1338_vm10, %v2622_v30  ;;  %2522 = vmatmul.msk.bf16.gmra.mxu2 %vm1338_vm10, %v2626_v24 }
 0x27a   : > { %2524 = vmatmul.msk.bf16.gmra.mxu3 %vm1338_vm10, %v2626_v24  ;;  %v3698_v24 = vld [vmem:[#allocation9_spill] sm:$0xff] }
 0x27b   : > { %v1550_v31 = vpop.permute.xlu0 %1549  ;;  %v1798_v47 = vpop.permute.xlu1 %1797  ;;  %v1727_v16 = vmul.f32 %v1717_v43, %v3698_v24 }
 0x27c   : > { %v3375_v3 = vpop.permute.xlu2 %1699  ;;  %v1554_v61 = vsel %vm709_vm5, %v1542_v50, %v1550_v31  ;;  %v1558_v1 = vsel %vm709_vm5, %v1550_v31, %v1542_v50  ;;  %v1813_v52 = vsel %vm962_vm7, %v1798_v47, %v3347_v4  ;;  %v1817_v6 = vsel %vm962_vm7, %v3347_v4, %v1798_v47 }
 0x27d   : > { %v1565_v38 = vmul.f32 %v1558_v1, %v3694_v45  ;;  %v1566_v25 = vmul.f32 %v1554_v61, %v3695_v23  ;;  %v1821_v30 = vmul.f32 %v1813_v52, %v3696_v8  ;;  %v1822_v4 = vmul.f32 %v1817_v6, %v3697_v33  ;;  %v3703_v6 = vld [vmem:[#allocation16_spill] sm:$0xff] }
 0x27f   : > { %v1569_v0 = vpack.c.bf16 %v1565_v38, %v1563_v44  ;;  %v1570_v22 = vpack.c.bf16 %v1566_v25, %v1564_v32 }
 0x281   : > { %1593 = vmatpush.bf16.msra.mxu0 %v1569_v0  ;;  %1612 = vmatpush.bf16.msra.mxu1 %v1570_v22 }
 0x283   : > { %v1702_v54 = vpop.permute.xlu0 %1701  ;;  %v1808_v36 = vpop.permute.xlu1 %1807 }
 0x284   : > { %v1710_v55 = vpop.permute.xlu2 %1709  ;;  %v1814_v18 = vsel %vm962_vm7, %v1800_v15, %v1808_v36  ;;  %v1818_v13 = vsel %vm962_vm7, %v1808_v36, %v1800_v15 }
 0x285   : > { %1594 = vmatpush.bf16.msra.mxu0 %v1567_v9  ;;  %1613 = vmatpush.bf16.msra.mxu1 %v1568_v56  ;;  %v1823_v50 = vmul.f32 %v1814_v18, %v3696_v8  ;;  %v1824_v15 = vmul.f32 %v1818_v13, %v3697_v33  ;;  %v1716_v1 = vsel %vm873_vm6, %v1702_v54, %v1710_v55  ;;  %v2633_v9 = vld [vmem:[%s3638_s3 + $0x60] sm:$0xff]  ;;  %v2632_v18 = vld [vmem:[%s3638_s3 + $0x58] sm:$0xff] }
 0x286   : > { %v1720_v26 = vsel %vm873_vm6, %v1710_v55, %v1702_v54  ;;  %v1725_v10 = vmul.f32 %v1716_v1, %v3698_v24  ;;  %v2631_v54 = vld [vmem:[%s3638_s3 + $0x50] sm:$0xff] }
 0x287   : > { %v1829_v31 = vpack.c.bf16 %v1823_v50, %v1821_v30  ;;  %v1830_v61 = vpack.c.bf16 %v1824_v15, %v1822_v4  ;;  %v1726_v0 = vmul.f32 %v1720_v26, %v3699_v62 }
 0x288   : > { %2533 = vmatmul.msk.bf16.vlgmr.msra.gmra.mxu0 %vm1338_vm10, %v2627_v59 }
 0x289   : > { %2535 = vmatmul.msk.bf16.vlgmr.msra.gmra.mxu1 %vm1338_vm10, %v2627_v59  ;;  %2545 = vmatmul.msk.bf16.vlgmr.msra.gmra.mxu2 %vm1338_vm10, %v2629_v60 }
 0x28a   : > { %2547 = vmatmul.msk.bf16.vlgmr.msra.gmra.mxu3 %vm1338_vm10, %v2629_v60 }
 0x28b   : > { %v3403_v2 = vpop.permute.xlu0 %1997  ;;  %v1708_v57 = vpop.permute.xlu1 %1707 }
 0x28c   : > { %v1812_v58 = vpop.permute.xlu2 %1811  ;;  %v1715_v44 = vsel %vm873_vm6, %v3375_v3, %v1708_v57  ;;  %v1719_v47 = vsel %vm873_vm6, %v1708_v57, %v3375_v3 }
 0x28d   : > { %v1723_v38 = vmul.f32 %v1715_v44, %v3698_v24  ;;  %v1724_v3 = vmul.f32 %v1719_v47, %v3699_v62 }
 0x28f   : > { %v1731_v41 = vpack.c.bf16 %v1725_v10, %v1723_v38  ;;  %v1732_v36 = vpack.c.bf16 %v1726_v0, %v1724_v3  ;;  %v2637_v3 = vld [vmem:[%s3638_s3 + $0x80] sm:$0xff] }
 0x293   : > { %v1804_v5 = vpop.permute.xlu0 %1803  ;;  %v1706_v17 = vpop.permute.xlu1 %1705 }
 0x294   : > { %v3412_v48 = vpop.permute.xlu2 %2005  ;;  %v1816_v35 = vsel %vm962_vm7, %v1804_v5, %v1812_v58  ;;  %v1820_v53 = vsel %vm962_vm7, %v1812_v58, %v1804_v5 }
 0x295   : > { %v1827_v49 = vmul.f32 %v1816_v35, %v3696_v8  ;;  %v1828_v42 = vmul.f32 %v1820_v53, %v3697_v33  ;;  %v3700_v8 = vld [vmem:[#allocation13_spill] sm:$0xff]  ;;  %v3701_v35 = vld [vmem:[#allocation14_spill] sm:$0xff]  ;;  %v2011_v13 = vsel %vm1140_vm9, %v3403_v2, %v3412_v48 }
 0x297   : > { %v1831_v14 = vpack.c.bf16 %v1827_v49, %v1825_v27  ;;  %v1832_v63 = vpack.c.bf16 %v1828_v42, %v1826_v11  ;;  %v2634_v49 = vld [vmem:[%s3638_s3 + $0x68] sm:$0xff] }
 0x298   : > { %2534 = vmatmul.msk.bf16.gmra.mxu0 %vm1338_vm10, %v2628_v7 }
 0x299   : > { %2536 = vmatmul.msk.bf16.gmra.mxu1 %vm1338_vm10, %v2628_v7  ;;  %2546 = vmatmul.msk.bf16.gmra.mxu2 %vm1338_vm10, %v2630_v12 }
 0x29a   : > { %2548 = vmatmul.msk.bf16.gmra.mxu3 %vm1338_vm10, %v2630_v12  ;;  %1855 = vmatpush.bf16.msrb.mxu2 %v1831_v14  ;;  %v2015_v12 = vsel %vm1140_vm9, %v3412_v48, %v3403_v2  ;;  %v3702_v2 = vld [vmem:[#allocation15_spill] sm:$0xff] }
 0x29b   : > { %1874 = vmatpush.bf16.msrb.mxu3 %v1832_v63  ;;  %v1714_v51 = vpop.permute.xlu0 %1713  ;;  %v1900_v45 = vpop.permute.xlu1 %1899  ;;  %v2021_v48 = vmul.f32 %v2011_v13, %v3702_v2  ;;  %v2022_v50 = vmul.f32 %v2015_v12, %v3703_v6 }
 0x29c   : > { %v1718_v23 = vsel %vm873_vm6, %v1706_v17, %v1714_v51  ;;  %v1722_v32 = vsel %vm873_vm6, %v1714_v51, %v1706_v17  ;;  %v1994_v29 = vpop.permute.xlu2 %1993 }
 0x29d   : > { %v1729_v37 = vmul.f32 %v1718_v23, %v3698_v24  ;;  %v1730_v46 = vmul.f32 %v1722_v32, %v3699_v62 }
 0x29e   : > { %1856 = vmatpush.bf16.msrb.mxu2 %v1829_v31 }
 0x29f   : > { %v1733_v25 = vpack.c.bf16 %v1729_v37, %v1727_v16  ;;  %v1734_v39 = vpack.c.bf16 %v1730_v46, %v1728_v20  ;;  %1875 = vmatpush.bf16.msrb.mxu3 %v1830_v61 }
 0x2a1   : > { %1757 = vmatpush.bf16.msrb.mxu0 %v1733_v25  ;;  %1776 = vmatpush.bf16.msrb.mxu1 %v1734_v39 }
 0x2a3   : > { %v1908_v22 = vpop.permute.xlu0 %1907  ;;  %v2002_v40 = vpop.permute.xlu1 %2001 }
 0x2a4   : > { %v2004_v55 = vpop.permute.xlu2 %2003  ;;  %v1913_v60 = vsel %vm1051_vm8, %v1900_v45, %v1908_v22  ;;  %v1917_v57 = vsel %vm1051_vm8, %v1908_v22, %v1900_v45  ;;  %v2009_v24 = vsel %vm1140_vm9, %v1994_v29, %v2002_v40  ;;  %v2013_v16 = vsel %vm1140_vm9, %v2002_v40, %v1994_v29  ;;  %v2635_v22 = vld [vmem:[%s3638_s3 + $0x70] sm:$0xff] }
 0x2a5   : > { %1758 = vmatpush.bf16.msrb.mxu0 %v1731_v41  ;;  %1777 = vmatpush.bf16.msrb.mxu1 %v1732_v36  ;;  %v1923_v27 = vmul.f32 %v1913_v60, %v3700_v8  ;;  %v1924_v53 = vmul.f32 %v1917_v57, %v3701_v35  ;;  %v2017_v44 = vmul.f32 %v2009_v24, %v3702_v2 }
 0x2a6   : > { %v2018_v23 = vmul.f32 %v2013_v16, %v3703_v6 }
 0x2a8   : > { %2557 = vmatmul.msk.bf16.vlgmr.msrb.gmra.mxu0 %vm1338_vm10, %v2631_v54 }
 0x2a9   : > { %2559 = vmatmul.msk.bf16.vlgmr.msrb.gmra.mxu1 %vm1338_vm10, %v2631_v54  ;;  %2569 = vmatmul.msk.bf16.vlgmr.msrb.gmra.mxu2 %vm1338_vm10, %v2633_v9  ;;  %v2638_v54 = vld [vmem:[%s3638_s3 + $0x88] sm:$0xff] }
 0x2aa   : > { %2571 = vmatmul.msk.bf16.vlgmr.msrb.gmra.mxu3 %vm1338_vm10, %v2633_v9  ;;  %v2636_v9 = vld [vmem:[%s3638_s3 + $0x78] sm:$0xff] }
 0x2ab   : > { %v1996_v56 = vpop.permute.xlu0 %1995  ;;  %v2000_v59 = vpop.permute.xlu1 %1999 }
 0x2ac   : > { %v1902_v58 = vpop.permute.xlu2 %1901  ;;  %v2010_v14 = vsel %vm1140_vm9, %v1996_v56, %v2004_v55  ;;  %v2014_v63 = vsel %vm1140_vm9, %v2004_v55, %v1996_v56 }
 0x2ad   : > { %v2019_v20 = vmul.f32 %v2010_v14, %v3702_v2  ;;  %v2020_v4 = vmul.f32 %v2014_v63, %v3703_v6 }
 0x2af   : > { %v2025_v46 = vpack.c.bf16 %v2019_v20, %v2017_v44  ;;  %v2026_v61 = vpack.c.bf16 %v2020_v4, %v2018_v23 }
 0x2b3   : > { %v1896_v28 = vpop.permute.xlu0 %1895  ;;  %v1910_v34 = vpop.permute.xlu1 %1909 }
 0x2b4   : > { %v1914_v5 = vsel %vm1051_vm8, %v1902_v58, %v1910_v34  ;;  %v1918_v17 = vsel %vm1051_vm8, %v1910_v34, %v1902_v58  ;;  %v1904_v62 = vpop.permute.xlu2 %1903 }
 0x2b5   : > { %v1925_v33 = vmul.f32 %v1914_v5, %v3700_v8  ;;  %v1926_v11 = vmul.f32 %v1918_v17, %v3701_v35  ;;  %v1911_v32 = vsel %vm1051_vm8, %v1896_v28, %v1904_v62  ;;  %v1915_v31 = vsel %vm1051_vm8, %v1904_v62, %v1896_v28 }
 0x2b6   : > { %v1919_v1 = vmul.f32 %v1911_v32, %v3700_v8  ;;  %v1920_v38 = vmul.f32 %v1915_v31, %v3701_v35 }
 0x2b7   : > { %v1929_v42 = vpack.c.bf16 %v1925_v33, %v1923_v27  ;;  %v1930_v7 = vpack.c.bf16 %v1926_v11, %v1924_v53 }
 0x2b8   : > { %2558 = vmatmul.msk.bf16.gmra.mxu0 %vm1338_vm10, %v2632_v18 }
 0x2b9   : > { %2560 = vmatmul.msk.bf16.gmra.mxu1 %vm1338_vm10, %v2632_v18  ;;  %2570 = vmatmul.msk.bf16.gmra.mxu2 %vm1338_vm10, %v2634_v49 }
 0x2ba   : > { %2572 = vmatmul.msk.bf16.gmra.mxu3 %vm1338_vm10, %v2634_v49  ;;  %1953 = vmatpush.bf16.msra.mxu0 %v1929_v42 }
 0x2bb   : > { %1972 = vmatpush.bf16.msra.mxu1 %v1930_v7  ;;  %v2008_v52 = vpop.permute.xlu0 %2007 }
 0x2bc   : > { %v2012_v43 = vsel %vm1140_vm9, %v2000_v59, %v2008_v52  ;;  %v2016_v19 = vsel %vm1140_vm9, %v2008_v52, %v2000_v59 }
 0x2bd   : > { %v2023_v15 = vmul.f32 %v2012_v43, %v3702_v2  ;;  %v2024_v30 = vmul.f32 %v2016_v19, %v3703_v6  ;;  %v1898_v47 = vpop.permute.xlu1 %1897 }
 0x2bf   : > { %v2027_v51 = vpack.c.bf16 %v2023_v15, %v2021_v48  ;;  %v2028_v45 = vpack.c.bf16 %v2024_v30, %v2022_v50 }
 0x2c1   : > { %2051 = vmatpush.bf16.msra.mxu2 %v2027_v51  ;;  %2070 = vmatpush.bf16.msra.mxu3 %v2028_v45 }
 0x2c3   : > { %v1906_v37 = vpop.permute.xlu0 %1905 }
 0x2c4   : > { %v1912_v26 = vsel %vm1051_vm8, %v1898_v47, %v1906_v37  ;;  %v1916_v29 = vsel %vm1051_vm8, %v1906_v37, %v1898_v47 }
 0x2c5   : > { %v1921_v25 = vmul.f32 %v1912_v26, %v3700_v8  ;;  %v1922_v39 = vmul.f32 %v1916_v29, %v3701_v35  ;;  %2052 = vmatpush.bf16.msra.mxu2 %v2025_v46  ;;  %2071 = vmatpush.bf16.msra.mxu3 %v2026_v61 }
 0x2c7   : > { %v1927_v10 = vpack.c.bf16 %v1921_v25, %v1919_v1  ;;  %v1928_v0 = vpack.c.bf16 %v1922_v39, %v1920_v38 }
 0x2c9   : > { %1954 = vmatpush.bf16.msra.mxu0 %v1927_v10  ;;  %1973 = vmatpush.bf16.msra.mxu1 %v1928_v0 }
 0x2ca   : > { %2593 = vmatmul.msk.bf16.vlgmr.msra.gmra.mxu2 %vm1338_vm10, %v2637_v3  ;;  %2595 = vmatmul.msk.bf16.vlgmr.msra.gmra.mxu3 %vm1338_vm10, %v2637_v3 }
 0x2cc   : > { %v1354_v21 = vpop.f32.mrf.mxu2  ;;  %2581 = vmatmul.msk.bf16.vlgmr.msra.gmra.mxu0 %vm1338_vm10, %v2635_v22  ;;  %2583 = vmatmul.msk.bf16.vlgmr.msra.gmra.mxu1 %vm1338_vm10, %v2635_v22 }
 0x2cd   : > { %v1373_v40 = vpop.f32.mrf.mxu3 }
 0x2d4   : > { %v1356_v41 = vpop.f32.mrf.mxu2 }
 0x2d5   : > { %v1375_v36 = vpop.f32.mrf.mxu3 }
 0x2da   : > { %2594 = vmatmul.msk.bf16.gmra.mxu2 %vm1338_vm10, %v2638_v54  ;;  %2596 = vmatmul.msk.bf16.gmra.mxu3 %vm1338_vm10, %v2638_v54 }
 0x2dc   : > { %v1359_v55 = vpop.f32.mrf.mxu2  ;;  %2582 = vmatmul.msk.bf16.gmra.mxu0 %vm1338_vm10, %v2636_v9  ;;  %2584 = vmatmul.msk.bf16.gmra.mxu1 %vm1338_vm10, %v2636_v9 }
 0x2dd   : > { %v1378_v56 = vpop.f32.mrf.mxu3 }
 0x2e4   : > { %v1361_v59 = vpop.f32.mrf.mxu2 }
 0x2e5   : > { %v1380_v60 = vpop.f32.mrf.mxu3  ;;  %v1408_v57 = vpop.f32.mrf.mxu0 }
 0x2e6   : > { %v1427_v58 = vpop.f32.mrf.mxu1  ;;  %v1409_v28 = vadd.f32 %v1408_v57, %v1354_v21 }
 0x2e7   : > { %v1428_v34 = vadd.f32 %v1427_v58, %v1373_v40 }
 0x2ec   : > { %v1498_v5 = vpop.f32.mrf.mxu2 }
 0x2ed   : > { %v1517_v17 = vpop.f32.mrf.mxu3  ;;  %v1527_v8 = vadd.f32 %v1498_v5, %v1409_v28  ;;  %v1410_v35 = vpop.f32.mrf.mxu0 }
 0x2ee   : > { %v1528_v27 = vadd.f32 %v1517_v17, %v1428_v34  ;;  %v1429_v53 = vpop.f32.mrf.mxu1  ;;  %v1411_v33 = vadd.f32 %v1410_v35, %v1356_v41 }
 0x2ef   : > { %v1430_v11 = vadd.f32 %v1429_v53, %v1375_v36 }
 0x2f4   : > { %v1500_v18 = vpop.f32.mrf.mxu2 }
 0x2f5   : > { %v1519_v49 = vpop.f32.mrf.mxu3  ;;  %v1529_v42 = vadd.f32 %v1500_v18, %v1411_v33  ;;  %v1413_v13 = vpop.f32.mrf.mxu0 }
 0x2f6   : > { %v1530_v7 = vadd.f32 %v1519_v49, %v1430_v11  ;;  %v1432_v12 = vpop.f32.mrf.mxu1  ;;  %v1414_v52 = vadd.f32 %v1413_v13, %v1359_v55 }
 0x2f7   : > { %v1433_v14 = vadd.f32 %v1432_v12, %v1378_v56 }
 0x2fc   : > { %v1503_v63 = vpop.f32.mrf.mxu2 }
 0x2fd   : > { %v1522_v43 = vpop.f32.mrf.mxu3  ;;  %v3567_v19 = vadd.f32 %v1503_v63, %v1414_v52  ;;  %v1415_v48 = vpop.f32.mrf.mxu0 }
 0x2fe   : > { %v3569_v2 = vadd.f32 %v1522_v43, %v1433_v14  ;;  %v1434_v6 = vpop.f32.mrf.mxu1  ;;  %v1416_v50 = vadd.f32 %v1415_v48, %v1361_v59 }
 0x2ff   : > { %v1435_v15 = vadd.f32 %v1434_v6, %v1380_v60 }
 0x304   : > { %v1505_v30 = vpop.f32.mrf.mxu2 }
 0x305   : > { %v1524_v24 = vpop.f32.mrf.mxu3  ;;  %v3571_v16 = vadd.f32 %v1505_v30, %v1416_v50  ;;  %v1596_v20 = vpop.f32.mrf.mxu0 }
 0x306   : > { %v3573_v62 = vadd.f32 %v1524_v24, %v1435_v15  ;;  %v1615_v4 = vpop.f32.mrf.mxu1  ;;  %v1625_v59 = vadd.f32 %v1596_v20, %v1527_v8  ;;  %v2094_v50 = vpop.permute.xlu1 %2093 }
 0x307   : > { %v1626_v60 = vadd.f32 %v1615_v4, %v1528_v27 }
 0x30c   : > { %v1662_v51 = vpop.f32.mrf.mxu2 }
 0x30d   : > { %v1681_v45 = vpop.f32.mrf.mxu3  ;;  %v1598_v44 = vpop.f32.mrf.mxu0  ;;  %v1691_v57 = vadd.f32 %v1662_v51, %v1625_v59 }
 0x30e   : > { %v1617_v23 = vpop.f32.mrf.mxu1  ;;  %v1692_v58 = vadd.f32 %v1681_v45, %v1626_v60  ;;  %v1627_v18 = vadd.f32 %v1598_v44, %v1529_v42 }
 0x30f   : > { %v1628_v49 = vadd.f32 %v1617_v23, %v1530_v7 }
 0x314   : > { %v1664_v32 = vpop.f32.mrf.mxu2 }
 0x315   : > { %v1683_v31 = vpop.f32.mrf.mxu3  ;;  %v1601_v47 = vpop.f32.mrf.mxu0  ;;  %v1693_v52 = vadd.f32 %v1664_v32, %v1627_v18 }
 0x316   : > { %v1620_v37 = vpop.f32.mrf.mxu1  ;;  %v1694_v8 = vadd.f32 %v1683_v31, %v1628_v49  ;;  %v1629_v24 = vadd.f32 %v1601_v47, %v3567_v19  ;;  %v2104_v18 = vpop.permute.xlu0 %2103 }
 0x317   : > { %v1630_v20 = vadd.f32 %v1620_v37, %v3569_v2  ;;  %v2099_v37 = vpop.permute.xlu2 %2098 }
 0x31c   : > { %v1667_v46 = vpop.f32.mrf.mxu2 }
 0x31d   : > { %v1686_v61 = vpop.f32.mrf.mxu3  ;;  %v3575_v1 = vpop.f32.mrf.mxu0 }
 0x31e   : > { %v3577_v26 = vpop.f32.mrf.mxu1 }
 0x324   : > { %v3579_v29 = vpop.f32.mrf.mxu2 }
 0x325   : > { %v3581_v38 = vpop.f32.mrf.mxu3  ;;  %v1760_v25 = vpop.f32.mrf.mxu0 }
 0x326   : > { %v1779_v39 = vpop.f32.mrf.mxu1  ;;  %v1789_v5 = vadd.f32 %v1760_v25, %v1691_v57  ;;  %v1695_v25 = vadd.f32 %v1667_v46, %v1629_v24  ;;  %v1631_v57 = vadd.f32 %v3575_v1, %v3571_v16  ;;  %v1632_v46 = vadd.f32 %v3577_v26, %v3573_v62 }
 0x327   : > { %v1790_v17 = vadd.f32 %v1779_v39, %v1692_v58  ;;  %v1696_v39 = vadd.f32 %v1686_v61, %v1630_v20 }
 0x32c   : > { %v1858_v3 = vpop.f32.mrf.mxu2 }
 0x32d   : > { %v1877_v10 = vpop.f32.mrf.mxu3  ;;  %v1762_v0 = vpop.f32.mrf.mxu0  ;;  %v1887_v35 = vadd.f32 %v1858_v3, %v1789_v5 }
 0x32e   : > { %v1781_v22 = vpop.f32.mrf.mxu1  ;;  %v1888_v53 = vadd.f32 %v1877_v10, %v1790_v17  ;;  %v1791_v63 = vadd.f32 %v1762_v0, %v1693_v52 }
 0x32f   : > { %v1792_v43 = vadd.f32 %v1781_v22, %v1694_v8 }
 0x334   : > { %v1860_v21 = vpop.f32.mrf.mxu2 }
 0x335   : > { %v1879_v40 = vpop.f32.mrf.mxu3  ;;  %v1765_v41 = vpop.f32.mrf.mxu0  ;;  %v1889_v42 = vadd.f32 %v1860_v21, %v1791_v63 }
 0x336   : > { %v1784_v36 = vpop.f32.mrf.mxu1  ;;  %v1890_v7 = vadd.f32 %v1879_v40, %v1792_v43  ;;  %v1793_v22 = vadd.f32 %v1765_v41, %v1695_v25 }
 0x337   : > { %v1794_v19 = vadd.f32 %v1784_v36, %v1696_v39 }
 0x33c   : > { %v1863_v54 = vpop.f32.mrf.mxu2 }
 0x33d   : > { %v1882_v9 = vpop.f32.mrf.mxu3  ;;  %v3583_v55 = vpop.f32.mrf.mxu0  ;;  %v1891_v21 = vadd.f32 %v1863_v54, %v1793_v22  ;;  %v1697_v54 = vadd.f32 %v3579_v29, %v1631_v57 }
 0x33e   : > { %v3585_v56 = vpop.f32.mrf.mxu1  ;;  %v1892_v40 = vadd.f32 %v1882_v9, %v1794_v19  ;;  %v1698_v9 = vadd.f32 %v3581_v38, %v1632_v46 }
 0x33f   : > { %v1795_v62 = vadd.f32 %v3583_v55, %v1697_v54 }
 0x340   : > { %v1796_v26 = vadd.f32 %v3585_v56, %v1698_v9 }
 0x344   : > { %v3587_v28 = vpop.f32.mrf.mxu2 }
 0x345   : > { %v3589_v34 = vpop.f32.mrf.mxu3  ;;  %v1893_v49 = vadd.f32 %v3587_v28, %v1795_v62 }
 0x346   : > { %v1894_v29 = vadd.f32 %v3589_v34, %v1796_v26 }
 0x349   : > { %v1956_v33 = vpop.f32.mrf.mxu0  ;;  %v1975_v11 = vpop.f32.mrf.mxu1 }
 0x34a   : > { %v1985_v13 = vadd.f32 %v1956_v33, %v1887_v35  ;;  %v1986_v12 = vadd.f32 %v1975_v11, %v1888_v53 }
 0x34d   : > { %v2054_v27 = vpop.f32.mrf.mxu2  ;;  %v2073_v14 = vpop.f32.mrf.mxu3 }
 0x34e   : > { %v2083_v48 = vadd.f32 %v2054_v27, %v1985_v13  ;;  %v2084_v6 = vadd.f32 %v2073_v14, %v1986_v12 }
 0x350   : > { %v2111_v15 = vadd.f32 %v2094_v50, %v2083_v48  ;;  %v2112_v30 = vadd.f32 %v2094_v50, %v2084_v6  ;;  %v2109_v6 = vpop.permute.xlu1 %2108 }
 0x351   : > { %v1958_v4 = vpop.f32.mrf.mxu0  ;;  %v1977_v51 = vpop.f32.mrf.mxu1 }
 0x352   : > { %2119 = vst [vmem:[%s3595_s19] sm:$0xff] %v2111_v15  ;;  %v1987_v45 = vadd.f32 %v1958_v4, %v1889_v42  ;;  %v1988_v44 = vadd.f32 %v1977_v51, %v1890_v7  ;;  %v2127_v23 = vadd.f32 %v2112_v30, %v2111_v15  ;;  %v2143_v32 = vmul.f32 %v2111_v15, %v2111_v15 }
 0x353   : > { %2120 = vst [vmem:[%s3595_s19 + $0x8] sm:$0xff] %v2112_v30  ;;  %v2144_v31 = vmul.f32 %v2112_v30, %v2112_v30 }
 0x354   : > { %2128 = vadd.xlane.f32.xlu2 %v2127_v23 }
 0x355   : > { %v2056_v3 = vpop.f32.mrf.mxu2  ;;  %v2075_v10 = vpop.f32.mrf.mxu3  ;;  %v2151_v0 = vadd.f32 %v2144_v31, %v2143_v32 }
 0x356   : > { %v2085_v47 = vadd.f32 %v2056_v3, %v1987_v45  ;;  %v2086_v2 = vadd.f32 %v2075_v10, %v1988_v44 }
 0x358   : > { %v2113_v59 = vadd.f32 %v2099_v37, %v2085_v47  ;;  %v2114_v60 = vadd.f32 %v2099_v37, %v2086_v2 }
 0x359   : > { %v1961_v61 = vpop.f32.mrf.mxu0  ;;  %v1980_v58 = vpop.f32.mrf.mxu1 }
 0x35a   : > { %2121 = vst [vmem:[%s3595_s19 + $0x10] sm:$0xff] %v2113_v59  ;;  %v1989_v5 = vadd.f32 %v1961_v61, %v1891_v21  ;;  %v1990_v41 = vadd.f32 %v1980_v58, %v1892_v40  ;;  %v2130_v36 = vadd.f32 %v2114_v60, %v2113_v59  ;;  %v2145_v17 = vmul.f32 %v2113_v59, %v2113_v59 }
 0x35b   : > { %2122 = vst [vmem:[%s3595_s19 + $0x18] sm:$0xff] %v2114_v60  ;;  %v2146_v35 = vmul.f32 %v2114_v60, %v2114_v60 }
 0x35c   : > { %2152 = vadd.xlane.f32.xlu2 %v2151_v0  ;;  %2131 = vadd.xlane.f32.xlu0 %v2130_v36 }
 0x35d   : > { %v2059_v16 = vpop.f32.mrf.mxu2  ;;  %v2078_v1 = vpop.f32.mrf.mxu3  ;;  %v2154_v53 = vadd.f32 %v2146_v35, %v2145_v17 }
 0x35e   : > { %v2087_v33 = vadd.f32 %v2059_v16, %v1989_v5  ;;  %v2088_v11 = vadd.f32 %v2078_v1, %v1990_v41 }
 0x360   : > { %v2115_v13 = vadd.f32 %v2104_v18, %v2087_v33  ;;  %v2116_v38 = vadd.f32 %v2104_v18, %v2088_v11 }
 0x361   : > { %v1963_v12 = vpop.f32.mrf.mxu0  ;;  %v1982_v52 = vpop.f32.mrf.mxu1 }
 0x362   : > { %2123 = vst [vmem:[%s3595_s19 + $0x20] sm:$0xff] %v2115_v13  ;;  %v1991_v8 = vadd.f32 %v1963_v12, %v1893_v49  ;;  %v1992_v27 = vadd.f32 %v1982_v52, %v1894_v29  ;;  %v2133_v14 = vadd.f32 %v2116_v38, %v2115_v13  ;;  %v2147_v55 = vmul.f32 %v2115_v13, %v2115_v13 }
 0x363   : > { %2124 = vst [vmem:[%s3595_s19 + $0x28] sm:$0xff] %v2116_v38  ;;  %v2148_v56 = vmul.f32 %v2116_v38, %v2116_v38 }
 0x364   : > { %2155 = vadd.xlane.f32.xlu0 %v2154_v53  ;;  %2134 = vadd.xlane.f32.xlu1 %v2133_v14 }
 0x365   : > { %v2061_v63 = vpop.f32.mrf.mxu2  ;;  %v2080_v43 = vpop.f32.mrf.mxu3  ;;  %v2157_v28 = vadd.f32 %v2148_v56, %v2147_v55 }
 0x366   : > { %v2089_v34 = vadd.f32 %v2061_v63, %v1991_v8  ;;  %v2090_v48 = vadd.f32 %v2080_v43, %v1992_v27 }
 0x368   : > { %v2117_v50 = vadd.f32 %v2109_v6, %v2089_v34  ;;  %v2118_v42 = vadd.f32 %v2109_v6, %v2090_v48 }
 0x36a   : > { %2125 = vst [vmem:[%s3595_s19 + $0x30] sm:$0xff] %v2117_v50  ;;  %v2136_v7 = vadd.f32 %v2118_v42, %v2117_v50  ;;  %v2149_v15 = vmul.f32 %v2117_v50, %v2117_v50  ;;  %v2150_v30 = vmul.f32 %v2118_v42, %v2118_v42 }
 0x36b   : > { %2126 = vst [vmem:[%s3595_s19 + $0x38] sm:$0xff] %v2118_v42 }
 0x36c   : > { %2158 = vadd.xlane.f32.xlu1 %v2157_v28  ;;  %2137 = vadd.xlane.f32.xlu2 %v2136_v7  ;;  %v2160_v24 = vadd.f32 %v2150_v30, %v2149_v15 }
 0x374   : > { %2161 = vadd.xlane.f32.xlu2 %v2160_v24 }
 0x3c7   : > { %v2129_v20 = vpop.xlane.xlu2 %2128 }
 0x3c8   : > { %2168 = vst.msk [vmem:[%s325_s22] sm:$0xff] %vm2167_vm11, %v2129_v20 }
 0x3cf   : > { %v2153_v4 = vpop.xlane.xlu2 %2152  ;;  %v2132_v51 = vpop.xlane.xlu0 %2131 }
 0x3d0   : > { %2172 = vst.msk [vmem:[%s330_s25] sm:$0xff] %vm2167_vm11, %v2153_v4 }
 0x3d1   : > { %2169 = vst.msk [vmem:[%s325_s22 + $0x8] sm:$0xff] %vm2167_vm11, %v2132_v51 }
 0x3d7   : > { %v2156_v45 = vpop.xlane.xlu0 %2155  ;;  %v2135_v44 = vpop.xlane.xlu1 %2134 }
 0x3d8   : > { %2173 = vst.msk [vmem:[%s330_s25 + $0x8] sm:$0xff] %vm2167_vm11, %v2156_v45 }
 0x3d9   : > { %2170 = vst.msk [vmem:[%s325_s22 + $0x10] sm:$0xff] %vm2167_vm11, %v2135_v44 }
 0x3df   : > { %v2159_v23 = vpop.xlane.xlu1 %2158  ;;  %v2138_v32 = vpop.xlane.xlu2 %2137 }
 0x3e0   : > { %2174 = vst.msk [vmem:[%s330_s25 + $0x10] sm:$0xff] %vm2167_vm11, %v2159_v23 }
 0x3e1   : > { %2171 = vst.msk [vmem:[%s325_s22 + $0x18] sm:$0xff] %vm2167_vm11, %v2138_v32 }
 0x3e7   : > { %v2162_v31 = vpop.xlane.xlu2 %2161 }
 0x3e8   : > { %2175 = vst.msk [vmem:[%s330_s25 + $0x18] sm:$0xff] %vm2167_vm11, %v2162_v31 }
 0x3e9 PF: > { %s19_s27 = sadd.s32 1, %s2665_s27  }
 0x3ea   : > { %p16_p4 = scmp.ge.s32.totalorder %s19_s27, 4  }
 0x3ec   :  { %18 = sbr.rel (!%p16_p4) target bundleno = 1 (0x1), region = 121 }

</bundles_post_ra>
